<compile_context>
chip_gen: v7x
topology: tpu7x:2x2x1
jax: 0.10.0
libtpu: 0.0.40
codegen_flags: <defaults>
</compile_context>

<pallas_src>
import functools

import jax
import jax.numpy as jnp
from jax.experimental import pallas as pl
from jax.experimental.pallas import tpu as pltpu

EPS = 1e-5  # nn.BatchNorm2d default


def _vmem_limit_bytes():
    """Generation-aware VMEM limit (leave ~12% headroom for Mosaic scratch)."""
    cap = 64 * 1024 * 1024  # conservative fallback (v7x-sized)
    try:
        info = pltpu.get_tpu_info()
        got = int(getattr(info, "vmem_capacity_bytes", cap))
        if got > 0:
            cap = got
    except Exception:
        pass
    return int(cap - cap // 8)


def _shift_lanes(x, d):
    """out[:, p] = x[:, (p + d) % HW] for a static offset d.

    Wrapped lanes are zeroed by the caller's border mask, so the wraparound is
    harmless.  Implemented with static slices + lane-axis concat (unambiguous);
    see module TODO about pltpu.roll for large HW.
    """
    hw = x.shape[-1]
    d = d % hw
    if d == 0:
        return x
    return jnp.concatenate([x[:, d:], x[:, :d]], axis=1)


def _conv_bn_stats_kernel(*refs, H, W, r_total, apply_prev, matmul_dtype):
    """One image of: [optional prev-stage BN+ReLU prologue] -> 3x3 conv
    (in-VMEM im2col, 9 MXU matmuls accumulated in f32) -> BN stats accumulation.

    Refs (ps_ref / psh_ref only present when apply_prev=True):
      x_ref     : (1, Cin, HW)   raw activation slab for image n (lane-dense)
      w_ref     : (9, Cout, Cin) conv taps, tap index = ky*3 + kx
      g_ref     : (Cout, 1)      BN gamma
      b_ref     : (Cout, 1)      BN beta
      ps_ref    : (Cin, 1)       previous stage's folded BN scale   [optional]
      psh_ref   : (Cin, 1)       previous stage's folded BN shift   [optional]
      y_ref     : (1, Cout, HW)  raw conv output, streamed back per image
      scale_ref : (Cout, 1)      folded BN scale  (written on last grid step)
      shift_ref : (Cout, 1)      folded BN shift  (written on last grid step)
      sum_ref   : (Cout, 1)      scratch: running per-channel sum
      ssq_ref   : (Cout, 1)      scratch: running per-channel sum of squares
    """
    if apply_prev:
        (x_ref, w_ref, g_ref, b_ref, ps_ref, psh_ref,
         y_ref, scale_ref, shift_ref, sum_ref, ssq_ref) = refs
    else:
        (x_ref, w_ref, g_ref, b_ref,
         y_ref, scale_ref, shift_ref, sum_ref, ssq_ref) = refs

    n = pl.program_id(0)
    n_imgs = pl.num_programs(0)
    hw = H * W

    @pl.when(n == 0)
    def _():
        sum_ref[...] = jnp.zeros_like(sum_ref)
        ssq_ref[...] = jnp.zeros_like(ssq_ref)

    x = x_ref[0].astype(jnp.float32)                          # (Cin, HW)
    if apply_prev:
        # Previous stage's BatchNorm + ReLU folded into this stage's prologue,
        # so the intermediate lives in HBM un-normalized (written/read once).
        x = jnp.maximum(x * ps_ref[...] + psh_ref[...], 0.0)
    x = x.astype(matmul_dtype)

    # Lane position / column within the image row (for border masking).
    pos = jax.lax.broadcasted_iota(jnp.int32, (1, hw), 1)
    col = pos % W

    # 3x3 conv, padding=1, stride=1: tap (ky, kx) reads input at (h+dy, w+dx),
    # i.e. a static shift of dy*W + dx along the flattened lane axis; positions
    # that fall outside the image (row/col wrap) are zeroed.  Conv bias is
    # intentionally omitted: a per-channel pre-BN bias cancels exactly in
    # training-mode BatchNorm (mean shifts by b, variance unchanged).
    acc = None
    for ky in range(3):
        dy = ky - 1
        for kx in range(3):
            dx = kx - 1
            tap = _shift_lanes(x, dy * W + dx)
            conds = []
            if dy < 0:
                conds.append(pos >= (-dy) * W)
            if dy > 0:
                conds.append(pos < hw - dy * W)
            if dx < 0:
                conds.append(col >= -dx)
            if dx > 0:
                conds.append(col < W - dx)
            if conds:
                valid = functools.reduce(lambda a, b: a & b, conds)
                tap = jnp.where(valid, tap, jnp.zeros_like(tap))
            w_tap = w_ref[ky * 3 + kx].astype(matmul_dtype)   # (Cout, Cin)
            part = jnp.dot(w_tap, tap, preferred_element_type=jnp.float32)
            acc = part if acc is None else acc + part         # (Cout, HW) f32

    # Single-pass global BN statistics, accumulated across the image grid axis
    # (kept in f32 even when the MXU operands are bf16).
    sum_ref[...] += jnp.sum(acc, axis=1, keepdims=True)
    ssq_ref[...] += jnp.sum(acc * acc, axis=1, keepdims=True)

    # Stream the raw conv tile straight back out — no full-R VMEM residency.
    y_ref[0] = acc.astype(y_ref.dtype)

    # Fold BN into per-channel (scale, shift) once every image is accumulated.
    @pl.when(n == n_imgs - 1)
    def _():
        inv_r = 1.0 / r_total
        mean = sum_ref[...] * inv_r
        # Clamp: single-pass variance can dip slightly negative from cancellation.
        var = jnp.maximum(ssq_ref[...] * inv_r - mean * mean, 0.0)
        scale = g_ref[...] * jax.lax.rsqrt(var + EPS)
        scale_ref[...] = scale
        shift_ref[...] = b_ref[...] - mean * scale


def _conv_bn_stats(x, w9, gamma, beta, prev=None, *, H, W,
                   matmul_dtype=jnp.float32, out_dtype=jnp.float32):
    """Conv2d(3x3, s=1, p=1) + training-mode BatchNorm statistics (lane-dense).

    x    : (N, Cin, H*W)   raw activations (optionally the previous stage's raw
                           conv output; `prev=(scale, shift)` normalizes it in
                           the kernel prologue).
    w9   : (9, Cout, Cin)  conv taps (tap index = ky*3 + kx).
    Returns (y_raw (N, Cout, H*W), scale (Cout, 1), shift (Cout, 1)) where the
    normalized activation is relu(y_raw * scale + shift).
    """
    N, Cin, HW = x.shape
    Cout = w9.shape[1]
    assert HW == H * W and w9.shape == (9, Cout, Cin)

    kernel = functools.partial(
        _conv_bn_stats_kernel, H=H, W=W, r_total=N * HW,
        apply_prev=prev is not None, matmul_dtype=matmul_dtype)

    inputs = [x, w9,
              gamma.reshape(Cout, 1).astype(jnp.float32),
              beta.reshape(Cout, 1).astype(jnp.float32)]
    in_specs = [
        pl.BlockSpec((1, Cin, HW), lambda n: (n, 0, 0)),      # per-image slab
        pl.BlockSpec((9, Cout, Cin), lambda n: (0, 0, 0)),
        pl.BlockSpec((Cout, 1), lambda n: (0, 0)),
        pl.BlockSpec((Cout, 1), lambda n: (0, 0)),
    ]
    if prev is not None:
        p_scale, p_shift = prev
        inputs += [p_scale, p_shift]
        in_specs += [pl.BlockSpec((Cin, 1), lambda n: (0, 0)),
                     pl.BlockSpec((Cin, 1), lambda n: (0, 0))]

    out_shapes = (
        jax.ShapeDtypeStruct((N, Cout, HW), out_dtype),
        jax.ShapeDtypeStruct((Cout, 1), jnp.float32),
        jax.ShapeDtypeStruct((Cout, 1), jnp.float32),
    )
    out_specs = (
        pl.BlockSpec((1, Cout, HW), lambda n: (n, 0, 0)),     # streamed writeback
        pl.BlockSpec((Cout, 1), lambda n: (0, 0)),            # grid-resident (tiny)
        pl.BlockSpec((Cout, 1), lambda n: (0, 0)),
    )

    return pl.pallas_call(
        kernel,
        out_shape=out_shapes,
        grid=(N,),
        in_specs=in_specs,
        out_specs=out_specs,
        scratch_shapes=[pltpu.VMEM((Cout, 1), jnp.float32),
                        pltpu.VMEM((Cout, 1), jnp.float32)],
        compiler_params=pltpu.CompilerParams(
            # Global BN stats accumulate across images -> reduction axis.
            dimension_semantics=("arbitrary",),
            vmem_limit_bytes=_vmem_limit_bytes(),
        ),
    )(*inputs)


def _scale_shift_relu_kernel(x_ref, scale_ref, shift_ref, o_ref):
    o_ref[0] = jnp.maximum(
        x_ref[0].astype(jnp.float32) * scale_ref[...] + shift_ref[...], 0.0
    ).astype(o_ref.dtype)


def _scale_shift_relu(x, scale, shift):
    """Tiled folded-BN normalize + ReLU: relu(x * scale + shift), per image."""
    N, C, HW = x.shape
    return pl.pallas_call(
        _scale_shift_relu_kernel,
        out_shape=jax.ShapeDtypeStruct((N, C, HW), jnp.float32),
        grid=(N,),
        in_specs=[pl.BlockSpec((1, C, HW), lambda n: (n, 0, 0)),
                  pl.BlockSpec((C, 1), lambda n: (0, 0)),
                  pl.BlockSpec((C, 1), lambda n: (0, 0))],
        out_specs=pl.BlockSpec((1, C, HW), lambda n: (n, 0, 0)),
        compiler_params=pltpu.CompilerParams(
            dimension_semantics=("parallel",),
            vmem_limit_bytes=_vmem_limit_bytes(),
        ),
    )(x, scale, shift)


def decode_block(x_nchw, params, *, matmul_dtype=jnp.float32):
    """Pallas forward of decodeBlock (training-mode BatchNorm). NCHW in/out.

    matmul_dtype=jnp.bfloat16 casts the MXU operands (and the stored raw
    intermediates) to bf16; stats and BN epilogue math stay f32.
    """
    N, Cin, H, W = x_nchw.shape
    Cmid = params["w1"].shape[0]
    Cout = params["w2"].shape[0]
    HW = H * W
    inter_dtype = jnp.bfloat16 if matmul_dtype == jnp.bfloat16 else jnp.float32

    # (N, C, H*W): channels on sublanes, flattened spatial on lanes.
    # Contiguous reshape — no NCHW<->CNHW transpose passes at the boundary.
    x = x_nchw.reshape(N, Cin, HW)

    # OIHW -> (9, Cout, Cin), tap index = ky*3 + kx (tiny; cast once for the MXU).
    w1 = jnp.transpose(params["w1"], (2, 3, 0, 1)).reshape(9, Cmid, Cin)
    w2 = jnp.transpose(params["w2"], (2, 3, 0, 1)).reshape(9, Cout, Cmid)
    w1 = w1.astype(matmul_dtype)
    w2 = w2.astype(matmul_dtype)

    # NOTE: conv biases b1/b2 are unused — a per-channel pre-BN bias cancels
    # exactly under training-mode BatchNorm (mean shifts by b, variance same).

    # Stage 1: conv1 + BN1 stats; raw conv output streams to HBM exactly once.
    y1_raw, s1, t1 = _conv_bn_stats(
        x, w1, params["g1"], params["bt1"], prev=None,
        H=H, W=W, matmul_dtype=matmul_dtype, out_dtype=inter_dtype)

    # Stage 2: BN1+ReLU folded into the prologue, then conv2 + BN2 stats.
    y2_raw, s2, t2 = _conv_bn_stats(
        y1_raw, w2, params["g2"], params["bt2"], prev=(s1, t1),
        H=H, W=W, matmul_dtype=matmul_dtype, out_dtype=inter_dtype)

    # Finalize BN2 + ReLU, tiled per image (streams with the writeback).
    out = _scale_shift_relu(y2_raw, s2, t2)
    return out.reshape(N, Cout, H, W)


# ---------------------------------------------------------------------------
# Pure-JAX reference (mirrors the PyTorch forward in NCHW) for verification.
# ---------------------------------------------------------------------------
def _reference(x_nchw, params):
    def stage(x, w, b, gamma, beta):
        y = jax.lax.conv_general_dilated(
            x, w, window_strides=(1, 1), padding=((1, 1), (1, 1)),
            dimension_numbers=("NCHW", "OIHW", "NCHW"),
        )
        y = y + b.reshape(1, -1, 1, 1)
        mean = y.mean(axis=(0, 2, 3), keepdims=True)
        var = ((y - mean) ** 2).mean(axis=(0, 2, 3), keepdims=True)
        y = (y - mean) * jax.lax.rsqrt(var + EPS) * gamma.reshape(1, -1, 1, 1)
        y = y + beta.reshape(1, -1, 1, 1)
        return jnp.maximum(y, 0.0)

    y = stage(x_nchw, params["w1"], params["b1"], params["g1"], params["bt1"])
    y = stage(y, params["w2"], params["b2"], params["g2"], params["bt2"])
    return y


if __name__ == "__main__":
    # Shapes consistent with decodeBlock(in_ch=4, out_ch=8), x: (2, 4, 16, 16)
    N, in_ch, out_ch, H, W = 2, 4, 8, 16, 16

    key = jax.random.PRNGKey(0)
    keys = jax.random.split(key, 9)
    params = {
        "w1": 0.1 * jax.random.normal(keys[0], (in_ch, in_ch, 3, 3), jnp.float32),
        "b1": 0.1 * jax.random.normal(keys[1], (in_ch,), jnp.float32),
        "g1": 1.0 + 0.1 * jax.random.normal(keys[2], (in_ch,), jnp.float32),
        "bt1": 0.1 * jax.random.normal(keys[3], (in_ch,), jnp.float32),
        "w2": 0.1 * jax.random.normal(keys[4], (out_ch, in_ch, 3, 3), jnp.float32),
        "b2": 0.1 * jax.random.normal(keys[5], (out_ch,), jnp.float32),
        "g2": 1.0 + 0.1 * jax.random.normal(keys[6], (out_ch,), jnp.float32),
        "bt2": 0.1 * jax.random.normal(keys[7], (out_ch,), jnp.float32),
    }
    x = jax.random.normal(keys[8], (N, in_ch, H, W), jnp.float32)

    ref = jax.block_until_ready(_reference(x, params))

    # f32 MXU operands: tight check against the pure-JAX reference.
    fwd_f32 = jax.jit(decode_block)
    out = jax.block_until_ready(fwd_f32(x, params))
    assert out.shape == (N, out_ch, H, W), out.shape
    assert jnp.allclose(out, ref, rtol=1e-4, atol=1e-4), (
        float(jnp.max(jnp.abs(out - ref))))

    # bf16 MXU operands (production setting): loose check, stats stay f32.
    fwd_bf16 = jax.jit(functools.partial(decode_block, matmul_dtype=jnp.bfloat16))
    out_bf16 = jax.block_until_ready(fwd_bf16(x, params))
    assert out_bf16.shape == (N, out_ch, H, W)
    assert bool(jnp.all(jnp.isfinite(out_bf16)))
    assert jnp.allclose(out_bf16, ref, rtol=0.1, atol=0.2), (
        float(jnp.max(jnp.abs(out_bf16 - ref))))

    print("KERNEL_OK")
</pallas_src>

<mosaic_0001>
module attributes {stable_mosaic.version = 11 : i64} {
  func.func @_conv_bn_stats_kernel(%arg0: i32, %arg1: memref<1x4x256xf32, #tpu.memory_space<vmem>>, %arg2: memref<9x4x4xf32, #tpu.memory_space<vmem>>, %arg3: memref<4x1xf32, #tpu.memory_space<vmem>>, %arg4: memref<4x1xf32, #tpu.memory_space<vmem>>, %arg5: memref<1x4x256xf32, #tpu.memory_space<vmem>>, %arg6: memref<4x1xf32, #tpu.memory_space<vmem>>, %arg7: memref<4x1xf32, #tpu.memory_space<vmem>>, %arg8: memref<4x1xf32, #tpu.memory_space<vmem>>, %arg9: memref<4x1xf32, #tpu.memory_space<vmem>>) attributes {dimension_semantics = [#tpu.dimension_semantics<arbitrary>], iteration_bounds = array<i64: 2>, scalar_prefetch = 0 : i64, scratch_operands = 2 : i64, tpu.core_type = #tpu.core_type<tc>, window_params = [{transform_indices = @transform_0, window_bounds = array<i64: 1, 4, 256>}, {pipeline_mode = #tpu.pipeline_mode<synchronous>, transform_indices = @transform_1, window_bounds = array<i64: 9, 4, 4>}, {pipeline_mode = #tpu.pipeline_mode<synchronous>, transform_indices = @transform_2, window_bounds = array<i64: 4, 1>}, {pipeline_mode = #tpu.pipeline_mode<synchronous>, transform_indices = @transform_3, window_bounds = array<i64: 4, 1>}, {transform_indices = @transform_4, window_bounds = array<i64: 1, 4, 256>}, {pipeline_mode = #tpu.pipeline_mode<synchronous>, transform_indices = @transform_5, window_bounds = array<i64: 4, 1>}, {pipeline_mode = #tpu.pipeline_mode<synchronous>, transform_indices = @transform_6, window_bounds = array<i64: 4, 1>}]} {
    %c0_i32 = arith.constant 0 : i32
    %0 = arith.cmpi eq, %arg0, %c0_i32 : i32
    %1 = arith.extui %0 : i1 to i32
    %c0_i32_0 = arith.constant 0 : i32
    %2 = arith.cmpi ne, %1, %c0_i32_0 : i32
    scf.if %2 {
      %cst_67 = arith.constant 0.000000e+00 : f32
      %158 = vector.broadcast %cst_67 : f32 to vector<4x1xf32>
      %c0_68 = arith.constant 0 : index
      %c0_69 = arith.constant 0 : index
      %159 = vector.load %arg8[%c0_68, %c0_69] : memref<4x1xf32, #tpu.memory_space<vmem>>, vector<4x1xf32>
      tpu.vector_store %arg8[%c0_68, %c0_69], %158 {strides = array<i32>} : memref<4x1xf32, #tpu.memory_space<vmem>>, vector<4x1xf32>,
      %cst_70 = arith.constant 0.000000e+00 : f32
      %160 = vector.broadcast %cst_70 : f32 to vector<4x1xf32>
      %c0_71 = arith.constant 0 : index
      %c0_72 = arith.constant 0 : index
      %161 = vector.load %arg9[%c0_71, %c0_72] : memref<4x1xf32, #tpu.memory_space<vmem>>, vector<4x1xf32>
      tpu.vector_store %arg9[%c0_71, %c0_72], %160 {strides = array<i32>} : memref<4x1xf32, #tpu.memory_space<vmem>>, vector<4x1xf32>,
    } else {
    }
    %c0 = arith.constant 0 : index
    %c0_1 = arith.constant 0 : index
    %c0_2 = arith.constant 0 : index
    %3 = vector.load %arg1[%c0, %c0_1, %c0_2] : memref<1x4x256xf32, #tpu.memory_space<vmem>>, vector<1x4x256xf32>
    %4 = vector.shape_cast %3 : vector<1x4x256xf32> to vector<4x256xf32>
    %5 = tpu.iota {dimensions = array<i32: 1>} : vector<1x256xi32>
    %c16_i32 = arith.constant 16 : i32
    %c0_i32_3 = arith.constant 0 : i32
    %6 = arith.cmpi eq, %c16_i32, %c0_i32_3 : i32
    %c1_i32 = arith.constant 1 : i32
    %7 = arith.select %6, %c1_i32, %c16_i32 : i32
    %8 = vector.broadcast %7 : i32 to vector<1x256xi32>
    %9 = arith.remsi %5, %8 : vector<1x256xi32>
    %c0_i32_4 = arith.constant 0 : i32
    %10 = vector.broadcast %c0_i32_4 : i32 to vector<1x256xi32>
    %11 = arith.cmpi ne, %9, %10 : vector<1x256xi32>
    %c0_i32_5 = arith.constant 0 : i32
    %12 = vector.broadcast %c0_i32_5 : i32 to vector<1x256xi32>
    %13 = arith.cmpi slt, %9, %12 : vector<1x256xi32>
    %c0_i32_6 = arith.constant 0 : i32
    %14 = arith.cmpi slt, %7, %c0_i32_6 : i32
    %15 = vector.broadcast %14 : i1 to vector<1x256xi1>
    %16 = vector.broadcast %15 : vector<1x256xi1> to vector<1x256xi1>
    %17 = arith.xori %13, %16 : vector<1x256xi1>
    %18 = arith.andi %17, %11 : vector<1x256xi1>
    %19 = vector.broadcast %7 : i32 to vector<1x256xi32>
    %20 = arith.addi %9, %19 : vector<1x256xi32>
    %21 = arith.select %18, %20, %9 : vector<1x256xi1>, vector<1x256xi32>
    %22 = vector.extract_strided_slice %4 {offsets = [0, 239], sizes = [4, 17], strides = [1, 1]} : vector<4x256xf32> to vector<4x17xf32>
    %23 = vector.extract_strided_slice %4 {offsets = [0, 0], sizes = [4, 239], strides = [1, 1]} : vector<4x256xf32> to vector<4x239xf32>
    %24 = tpu.concatenate %22, %23 in 1 : vector<4x17xf32>, vector<4x239xf32> -> vector<4x256xf32>
    %c16_i32_7 = arith.constant 16 : i32
    %25 = vector.broadcast %c16_i32_7 : i32 to vector<1x256xi32>
    %26 = arith.cmpi sge, %5, %25 : vector<1x256xi32>
    %c1_i32_8 = arith.constant 1 : i32
    %27 = vector.broadcast %c1_i32_8 : i32 to vector<1x256xi32>
    %28 = arith.cmpi sge, %21, %27 : vector<1x256xi32>
    %29 = arith.andi %26, %28 : vector<1x256xi1>
    %cst = arith.constant 0.000000e+00 : f32
    %30 = vector.broadcast %cst : f32 to vector<4x256xf32>
    %31 = vector.shape_cast %29 : vector<1x256xi1> to vector<1x256xi1>
    %32 = vector.broadcast %31 : vector<1x256xi1> to vector<4x256xi1>
    %33 = arith.select %32, %24, %30 : vector<4x256xi1>, vector<4x256xf32>
    %c0_9 = arith.constant 0 : index
    %c0_10 = arith.constant 0 : index
    %c0_11 = arith.constant 0 : index
    %34 = vector.load %arg2[%c0_9, %c0_10, %c0_11] : memref<9x4x4xf32, #tpu.memory_space<vmem>>, vector<1x4x4xf32>
    %35 = vector.shape_cast %34 : vector<1x4x4xf32> to vector<4x4xf32>
    %cst_12 = arith.constant dense<0.000000e+00> : vector<4x256xf32>
    %36 = tpu.matmul %35, %33, %cst_12 {dimension_numbers = #tpu.dot_dimension_numbers<[1], [0], [0], [1], [0, 0, 1, 1], [], []>} : vector<4x4xf32>, vector<4x256xf32>, vector<4x256xf32> -> vector<4x256xf32>
    %37 = vector.extract_strided_slice %4 {offsets = [0, 240], sizes = [4, 16], strides = [1, 1]} : vector<4x256xf32> to vector<4x16xf32>
    %38 = vector.extract_strided_slice %4 {offsets = [0, 0], sizes = [4, 240], strides = [1, 1]} : vector<4x256xf32> to vector<4x240xf32>
    %39 = tpu.concatenate %37, %38 in 1 : vector<4x16xf32>, vector<4x240xf32> -> vector<4x256xf32>
    %c16_i32_13 = arith.constant 16 : i32
    %40 = vector.broadcast %c16_i32_13 : i32 to vector<1x256xi32>
    %41 = arith.cmpi sge, %5, %40 : vector<1x256xi32>
    %cst_14 = arith.constant 0.000000e+00 : f32
    %42 = vector.broadcast %cst_14 : f32 to vector<4x256xf32>
    %43 = vector.shape_cast %41 : vector<1x256xi1> to vector<1x256xi1>
    %44 = vector.broadcast %43 : vector<1x256xi1> to vector<4x256xi1>
    %45 = arith.select %44, %39, %42 : vector<4x256xi1>, vector<4x256xf32>
    %c1 = arith.constant 1 : index
    %c0_15 = arith.constant 0 : index
    %c0_16 = arith.constant 0 : index
    %46 = vector.load %arg2[%c1, %c0_15, %c0_16] : memref<9x4x4xf32, #tpu.memory_space<vmem>>, vector<1x4x4xf32>
    %47 = vector.shape_cast %46 : vector<1x4x4xf32> to vector<4x4xf32>
    %cst_17 = arith.constant dense<0.000000e+00> : vector<4x256xf32>
    %48 = tpu.matmul %47, %45, %cst_17 {dimension_numbers = #tpu.dot_dimension_numbers<[1], [0], [0], [1], [0, 0, 1, 1], [], []>} : vector<4x4xf32>, vector<4x256xf32>, vector<4x256xf32> -> vector<4x256xf32>
    %49 = arith.addf %36, %48 : vector<4x256xf32>
    %50 = vector.extract_strided_slice %4 {offsets = [0, 241], sizes = [4, 15], strides = [1, 1]} : vector<4x256xf32> to vector<4x15xf32>
    %51 = vector.extract_strided_slice %4 {offsets = [0, 0], sizes = [4, 241], strides = [1, 1]} : vector<4x256xf32> to vector<4x241xf32>
    %52 = tpu.concatenate %50, %51 in 1 : vector<4x15xf32>, vector<4x241xf32> -> vector<4x256xf32>
    %c16_i32_18 = arith.constant 16 : i32
    %53 = vector.broadcast %c16_i32_18 : i32 to vector<1x256xi32>
    %54 = arith.cmpi sge, %5, %53 : vector<1x256xi32>
    %c15_i32 = arith.constant 15 : i32
    %55 = vector.broadcast %c15_i32 : i32 to vector<1x256xi32>
    %56 = arith.cmpi slt, %21, %55 : vector<1x256xi32>
    %57 = arith.andi %54, %56 : vector<1x256xi1>
    %cst_19 = arith.constant 0.000000e+00 : f32
    %58 = vector.broadcast %cst_19 : f32 to vector<4x256xf32>
    %59 = vector.shape_cast %57 : vector<1x256xi1> to vector<1x256xi1>
    %60 = vector.broadcast %59 : vector<1x256xi1> to vector<4x256xi1>
    %61 = arith.select %60, %52, %58 : vector<4x256xi1>, vector<4x256xf32>
    %c2 = arith.constant 2 : index
    %c0_20 = arith.constant 0 : index
    %c0_21 = arith.constant 0 : index
    %62 = vector.load %arg2[%c2, %c0_20, %c0_21] : memref<9x4x4xf32, #tpu.memory_space<vmem>>, vector<1x4x4xf32>
    %63 = vector.shape_cast %62 : vector<1x4x4xf32> to vector<4x4xf32>
    %cst_22 = arith.constant dense<0.000000e+00> : vector<4x256xf32>
    %64 = tpu.matmul %63, %61, %cst_22 {dimension_numbers = #tpu.dot_dimension_numbers<[1], [0], [0], [1], [0, 0, 1, 1], [], []>} : vector<4x4xf32>, vector<4x256xf32>, vector<4x256xf32> -> vector<4x256xf32>
    %65 = arith.addf %49, %64 : vector<4x256xf32>
    %66 = vector.extract_strided_slice %4 {offsets = [0, 255], sizes = [4, 1], strides = [1, 1]} : vector<4x256xf32> to vector<4x1xf32>
    %67 = vector.extract_strided_slice %4 {offsets = [0, 0], sizes = [4, 255], strides = [1, 1]} : vector<4x256xf32> to vector<4x255xf32>
    %68 = tpu.concatenate %66, %67 in 1 : vector<4x1xf32>, vector<4x255xf32> -> vector<4x256xf32>
    %c1_i32_23 = arith.constant 1 : i32
    %69 = vector.broadcast %c1_i32_23 : i32 to vector<1x256xi32>
    %70 = arith.cmpi sge, %21, %69 : vector<1x256xi32>
    %cst_24 = arith.constant 0.000000e+00 : f32
    %71 = vector.broadcast %cst_24 : f32 to vector<4x256xf32>
    %72 = vector.shape_cast %70 : vector<1x256xi1> to vector<1x256xi1>
    %73 = vector.broadcast %72 : vector<1x256xi1> to vector<4x256xi1>
    %74 = arith.select %73, %68, %71 : vector<4x256xi1>, vector<4x256xf32>
    %c3 = arith.constant 3 : index
    %c0_25 = arith.constant 0 : index
    %c0_26 = arith.constant 0 : index
    %75 = vector.load %arg2[%c3, %c0_25, %c0_26] : memref<9x4x4xf32, #tpu.memory_space<vmem>>, vector<1x4x4xf32>
    %76 = vector.shape_cast %75 : vector<1x4x4xf32> to vector<4x4xf32>
    %cst_27 = arith.constant dense<0.000000e+00> : vector<4x256xf32>
    %77 = tpu.matmul %76, %74, %cst_27 {dimension_numbers = #tpu.dot_dimension_numbers<[1], [0], [0], [1], [0, 0, 1, 1], [], []>} : vector<4x4xf32>, vector<4x256xf32>, vector<4x256xf32> -> vector<4x256xf32>
    %78 = arith.addf %65, %77 : vector<4x256xf32>
    %c4 = arith.constant 4 : index
    %c0_28 = arith.constant 0 : index
    %c0_29 = arith.constant 0 : index
    %79 = vector.load %arg2[%c4, %c0_28, %c0_29] : memref<9x4x4xf32, #tpu.memory_space<vmem>>, vector<1x4x4xf32>
    %80 = vector.shape_cast %79 : vector<1x4x4xf32> to vector<4x4xf32>
    %cst_30 = arith.constant dense<0.000000e+00> : vector<4x256xf32>
    %81 = tpu.matmul %80, %4, %cst_30 {dimension_numbers = #tpu.dot_dimension_numbers<[1], [0], [0], [1], [0, 0, 1, 1], [], []>} : vector<4x4xf32>, vector<4x256xf32>, vector<4x256xf32> -> vector<4x256xf32>
    %82 = arith.addf %78, %81 : vector<4x256xf32>
    %83 = vector.extract_strided_slice %4 {offsets = [0, 1], sizes = [4, 255], strides = [1, 1]} : vector<4x256xf32> to vector<4x255xf32>
    %84 = vector.extract_strided_slice %4 {offsets = [0, 0], sizes = [4, 1], strides = [1, 1]} : vector<4x256xf32> to vector<4x1xf32>
    %85 = tpu.concatenate %83, %84 in 1 : vector<4x255xf32>, vector<4x1xf32> -> vector<4x256xf32>
    %c15_i32_31 = arith.constant 15 : i32
    %86 = vector.broadcast %c15_i32_31 : i32 to vector<1x256xi32>
    %87 = arith.cmpi slt, %21, %86 : vector<1x256xi32>
    %cst_32 = arith.constant 0.000000e+00 : f32
    %88 = vector.broadcast %cst_32 : f32 to vector<4x256xf32>
    %89 = vector.shape_cast %87 : vector<1x256xi1> to vector<1x256xi1>
    %90 = vector.broadcast %89 : vector<1x256xi1> to vector<4x256xi1>
    %91 = arith.select %90, %85, %88 : vector<4x256xi1>, vector<4x256xf32>
    %c5 = arith.constant 5 : index
    %c0_33 = arith.constant 0 : index
    %c0_34 = arith.constant 0 : index
    %92 = vector.load %arg2[%c5, %c0_33, %c0_34] : memref<9x4x4xf32, #tpu.memory_space<vmem>>, vector<1x4x4xf32>
    %93 = vector.shape_cast %92 : vector<1x4x4xf32> to vector<4x4xf32>
    %cst_35 = arith.constant dense<0.000000e+00> : vector<4x256xf32>
    %94 = tpu.matmul %93, %91, %cst_35 {dimension_numbers = #tpu.dot_dimension_numbers<[1], [0], [0], [1], [0, 0, 1, 1], [], []>} : vector<4x4xf32>, vector<4x256xf32>, vector<4x256xf32> -> vector<4x256xf32>
    %95 = arith.addf %82, %94 : vector<4x256xf32>
    %96 = vector.extract_strided_slice %4 {offsets = [0, 15], sizes = [4, 241], strides = [1, 1]} : vector<4x256xf32> to vector<4x241xf32>
    %97 = vector.extract_strided_slice %4 {offsets = [0, 0], sizes = [4, 15], strides = [1, 1]} : vector<4x256xf32> to vector<4x15xf32>
    %98 = tpu.concatenate %96, %97 in 1 : vector<4x241xf32>, vector<4x15xf32> -> vector<4x256xf32>
    %c240_i32 = arith.constant 240 : i32
    %99 = vector.broadcast %c240_i32 : i32 to vector<1x256xi32>
    %100 = arith.cmpi slt, %5, %99 : vector<1x256xi32>
    %c1_i32_36 = arith.constant 1 : i32
    %101 = vector.broadcast %c1_i32_36 : i32 to vector<1x256xi32>
    %102 = arith.cmpi sge, %21, %101 : vector<1x256xi32>
    %103 = arith.andi %100, %102 : vector<1x256xi1>
    %cst_37 = arith.constant 0.000000e+00 : f32
    %104 = vector.broadcast %cst_37 : f32 to vector<4x256xf32>
    %105 = vector.shape_cast %103 : vector<1x256xi1> to vector<1x256xi1>
    %106 = vector.broadcast %105 : vector<1x256xi1> to vector<4x256xi1>
    %107 = arith.select %106, %98, %104 : vector<4x256xi1>, vector<4x256xf32>
    %c6 = arith.constant 6 : index
    %c0_38 = arith.constant 0 : index
    %c0_39 = arith.constant 0 : index
    %108 = vector.load %arg2[%c6, %c0_38, %c0_39] : memref<9x4x4xf32, #tpu.memory_space<vmem>>, vector<1x4x4xf32>
    %109 = vector.shape_cast %108 : vector<1x4x4xf32> to vector<4x4xf32>
    %cst_40 = arith.constant dense<0.000000e+00> : vector<4x256xf32>
    %110 = tpu.matmul %109, %107, %cst_40 {dimension_numbers = #tpu.dot_dimension_numbers<[1], [0], [0], [1], [0, 0, 1, 1], [], []>} : vector<4x4xf32>, vector<4x256xf32>, vector<4x256xf32> -> vector<4x256xf32>
    %111 = arith.addf %95, %110 : vector<4x256xf32>
    %112 = vector.extract_strided_slice %4 {offsets = [0, 16], sizes = [4, 240], strides = [1, 1]} : vector<4x256xf32> to vector<4x240xf32>
    %113 = vector.extract_strided_slice %4 {offsets = [0, 0], sizes = [4, 16], strides = [1, 1]} : vector<4x256xf32> to vector<4x16xf32>
    %114 = tpu.concatenate %112, %113 in 1 : vector<4x240xf32>, vector<4x16xf32> -> vector<4x256xf32>
    %c240_i32_41 = arith.constant 240 : i32
    %115 = vector.broadcast %c240_i32_41 : i32 to vector<1x256xi32>
    %116 = arith.cmpi slt, %5, %115 : vector<1x256xi32>
    %cst_42 = arith.constant 0.000000e+00 : f32
    %117 = vector.broadcast %cst_42 : f32 to vector<4x256xf32>
    %118 = vector.shape_cast %116 : vector<1x256xi1> to vector<1x256xi1>
    %119 = vector.broadcast %118 : vector<1x256xi1> to vector<4x256xi1>
    %120 = arith.select %119, %114, %117 : vector<4x256xi1>, vector<4x256xf32>
    %c7 = arith.constant 7 : index
    %c0_43 = arith.constant 0 : index
    %c0_44 = arith.constant 0 : index
    %121 = vector.load %arg2[%c7, %c0_43, %c0_44] : memref<9x4x4xf32, #tpu.memory_space<vmem>>, vector<1x4x4xf32>
    %122 = vector.shape_cast %121 : vector<1x4x4xf32> to vector<4x4xf32>
    %cst_45 = arith.constant dense<0.000000e+00> : vector<4x256xf32>
    %123 = tpu.matmul %122, %120, %cst_45 {dimension_numbers = #tpu.dot_dimension_numbers<[1], [0], [0], [1], [0, 0, 1, 1], [], []>} : vector<4x4xf32>, vector<4x256xf32>, vector<4x256xf32> -> vector<4x256xf32>
    %124 = arith.addf %111, %123 : vector<4x256xf32>
    %125 = vector.extract_strided_slice %4 {offsets = [0, 17], sizes = [4, 239], strides = [1, 1]} : vector<4x256xf32> to vector<4x239xf32>
    %126 = vector.extract_strided_slice %4 {offsets = [0, 0], sizes = [4, 17], strides = [1, 1]} : vector<4x256xf32> to vector<4x17xf32>
    %127 = tpu.concatenate %125, %126 in 1 : vector<4x239xf32>, vector<4x17xf32> -> vector<4x256xf32>
    %c240_i32_46 = arith.constant 240 : i32
    %128 = vector.broadcast %c240_i32_46 : i32 to vector<1x256xi32>
    %129 = arith.cmpi slt, %5, %128 : vector<1x256xi32>
    %c15_i32_47 = arith.constant 15 : i32
    %130 = vector.broadcast %c15_i32_47 : i32 to vector<1x256xi32>
    %131 = arith.cmpi slt, %21, %130 : vector<1x256xi32>
    %132 = arith.andi %129, %131 : vector<1x256xi1>
    %cst_48 = arith.constant 0.000000e+00 : f32
    %133 = vector.broadcast %cst_48 : f32 to vector<4x256xf32>
    %134 = vector.shape_cast %132 : vector<1x256xi1> to vector<1x256xi1>
    %135 = vector.broadcast %134 : vector<1x256xi1> to vector<4x256xi1>
    %136 = arith.select %135, %127, %133 : vector<4x256xi1>, vector<4x256xf32>
    %c8 = arith.constant 8 : index
    %c0_49 = arith.constant 0 : index
    %c0_50 = arith.constant 0 : index
    %137 = vector.load %arg2[%c8, %c0_49, %c0_50] : memref<9x4x4xf32, #tpu.memory_space<vmem>>, vector<1x4x4xf32>
    %138 = vector.shape_cast %137 : vector<1x4x4xf32> to vector<4x4xf32>
    %cst_51 = arith.constant dense<0.000000e+00> : vector<4x256xf32>
    %139 = tpu.matmul %138, %136, %cst_51 {dimension_numbers = #tpu.dot_dimension_numbers<[1], [0], [0], [1], [0, 0, 1, 1], [], []>} : vector<4x4xf32>, vector<4x256xf32>, vector<4x256xf32> -> vector<4x256xf32>
    %140 = arith.addf %124, %139 : vector<4x256xf32>
    %c0_52 = arith.constant 0 : index
    %c0_53 = arith.constant 0 : index
    %141 = vector.load %arg8[%c0_52, %c0_53] : memref<4x1xf32, #tpu.memory_space<vmem>>, vector<4x1xf32>
    %cst_54 = arith.constant dense<0.000000e+00> : vector<4xf32>
    %142 = vector.multi_reduction <add>, %140, %cst_54 [1] : vector<4x256xf32> to vector<4xf32>
    %143 = vector.shape_cast %142 : vector<4xf32> to vector<4x1xf32>
    %144 = arith.addf %141, %143 : vector<4x1xf32>
    %c0_55 = arith.constant 0 : index
    %c0_56 = arith.constant 0 : index
    %145 = vector.load %arg8[%c0_55, %c0_56] : memref<4x1xf32, #tpu.memory_space<vmem>>, vector<4x1xf32>
    tpu.vector_store %arg8[%c0_55, %c0_56], %144 {strides = array<i32>} : memref<4x1xf32, #tpu.memory_space<vmem>>, vector<4x1xf32>,
    %c0_57 = arith.constant 0 : index
    %c0_58 = arith.constant 0 : index
    %146 = vector.load %arg9[%c0_57, %c0_58] : memref<4x1xf32, #tpu.memory_space<vmem>>, vector<4x1xf32>
    %147 = arith.mulf %140, %140 : vector<4x256xf32>
    %cst_59 = arith.constant dense<0.000000e+00> : vector<4xf32>
    %148 = vector.multi_reduction <add>, %147, %cst_59 [1] : vector<4x256xf32> to vector<4xf32>
    %149 = vector.shape_cast %148 : vector<4xf32> to vector<4x1xf32>
    %150 = arith.addf %146, %149 : vector<4x1xf32>
    %c0_60 = arith.constant 0 : index
    %c0_61 = arith.constant 0 : index
    %151 = vector.load %arg9[%c0_60, %c0_61] : memref<4x1xf32, #tpu.memory_space<vmem>>, vector<4x1xf32>
    tpu.vector_store %arg9[%c0_60, %c0_61], %150 {strides = array<i32>} : memref<4x1xf32, #tpu.memory_space<vmem>>, vector<4x1xf32>,
    %c0_62 = arith.constant 0 : index
    %c0_63 = arith.constant 0 : index
    %c0_64 = arith.constant 0 : index
    %152 = vector.load %arg5[%c0_62, %c0_63, %c0_64] : memref<1x4x256xf32, #tpu.memory_space<vmem>>, vector<1x4x256xf32>
    %153 = vector.shape_cast %152 : vector<1x4x256xf32> to vector<4x256xf32>
    %154 = vector.shape_cast %140 : vector<4x256xf32> to vector<1x4x256xf32>
    tpu.vector_store %arg5[%c0_62, %c0_63, %c0_64], %154 {strides = array<i32>} : memref<1x4x256xf32, #tpu.memory_space<vmem>>, vector<1x4x256xf32>,
    %c1_i32_65 = arith.constant 1 : i32
    %155 = arith.cmpi eq, %arg0, %c1_i32_65 : i32
    %156 = arith.extui %155 : i1 to i32
    %c0_i32_66 = arith.constant 0 : i32
    %157 = arith.cmpi ne, %156, %c0_i32_66 : i32
    scf.if %157 {
      %c0_67 = arith.constant 0 : index
      %c0_68 = arith.constant 0 : index
      %158 = vector.load %arg8[%c0_67, %c0_68] : memref<4x1xf32, #tpu.memory_space<vmem>>, vector<4x1xf32>
      %cst_69 = arith.constant 0.001953125 : f32
      %159 = vector.broadcast %cst_69 : f32 to vector<4x1xf32>
      %160 = arith.mulf %158, %159 : vector<4x1xf32>
      %c0_70 = arith.constant 0 : index
      %c0_71 = arith.constant 0 : index
      %161 = vector.load %arg9[%c0_70, %c0_71] : memref<4x1xf32, #tpu.memory_space<vmem>>, vector<4x1xf32>
      %cst_72 = arith.constant 0.001953125 : f32
      %162 = vector.broadcast %cst_72 : f32 to vector<4x1xf32>
      %163 = arith.mulf %161, %162 : vector<4x1xf32>
      %164 = arith.mulf %160, %160 : vector<4x1xf32>
      %165 = arith.subf %163, %164 : vector<4x1xf32>
      %cst_73 = arith.constant 0.000000e+00 : f32
      %166 = vector.broadcast %cst_73 : f32 to vector<4x1xf32>
      %167 = arith.maximumf %165, %166 : vector<4x1xf32>
      %c0_74 = arith.constant 0 : index
      %c0_75 = arith.constant 0 : index
      %168 = vector.load %arg3[%c0_74, %c0_75] : memref<4x1xf32, #tpu.memory_space<vmem>>, vector<4x1xf32>
      %cst_76 = arith.constant 9.99999974E-6 : f32
      %169 = vector.broadcast %cst_76 : f32 to vector<4x1xf32>
      %170 = arith.addf %167, %169 : vector<4x1xf32>
      %171 = math.rsqrt %170 : vector<4x1xf32>
      %172 = arith.mulf %168, %171 : vector<4x1xf32>
      %c0_77 = arith.constant 0 : index
      %c0_78 = arith.constant 0 : index
      %173 = vector.load %arg6[%c0_77, %c0_78] : memref<4x1xf32, #tpu.memory_space<vmem>>, vector<4x1xf32>
      tpu.vector_store %arg6[%c0_77, %c0_78], %172 {strides = array<i32>} : memref<4x1xf32, #tpu.memory_space<vmem>>, vector<4x1xf32>,
      %c0_79 = arith.constant 0 : index
      %c0_80 = arith.constant 0 : index
      %174 = vector.load %arg4[%c0_79, %c0_80] : memref<4x1xf32, #tpu.memory_space<vmem>>, vector<4x1xf32>
      %175 = arith.mulf %160, %172 : vector<4x1xf32>
      %176 = arith.subf %174, %175 : vector<4x1xf32>
      %c0_81 = arith.constant 0 : index
      %c0_82 = arith.constant 0 : index
      %177 = vector.load %arg7[%c0_81, %c0_82] : memref<4x1xf32, #tpu.memory_space<vmem>>, vector<4x1xf32>
      tpu.vector_store %arg7[%c0_81, %c0_82], %176 {strides = array<i32>} : memref<4x1xf32, #tpu.memory_space<vmem>>, vector<4x1xf32>,
    } else {
    }
    return
  }
  func.func @transform_0(%arg0: i32) -> (i32, i32, i32) {
    %c0_i32 = arith.constant 0 : i32
    %c0_i32_0 = arith.constant 0 : i32
    %c0_i32_1 = arith.constant 0 : i32
    return %arg0, %c0_i32, %c0_i32_0 : i32, i32, i32
  }
  func.func @transform_1(%arg0: i32) -> (i32, i32, i32) {
    %c0_i32 = arith.constant 0 : i32
    %c0_i32_0 = arith.constant 0 : i32
    %c0_i32_1 = arith.constant 0 : i32
    %c0_i32_2 = arith.constant 0 : i32
    return %c0_i32, %c0_i32_0, %c0_i32_1 : i32, i32, i32
  }
  func.func @transform_2(%arg0: i32) -> (i32, i32) {
    %c0_i32 = arith.constant 0 : i32
    %c0_i32_0 = arith.constant 0 : i32
    %c0_i32_1 = arith.constant 0 : i32
    return %c0_i32, %c0_i32_0 : i32, i32
  }
  func.func @transform_3(%arg0: i32) -> (i32, i32) {
    %c0_i32 = arith.constant 0 : i32
    %c0_i32_0 = arith.constant 0 : i32
    %c0_i32_1 = arith.constant 0 : i32
    return %c0_i32, %c0_i32_0 : i32, i32
  }
  func.func @transform_4(%arg0: i32) -> (i32, i32, i32) {
    %c0_i32 = arith.constant 0 : i32
    %c0_i32_0 = arith.constant 0 : i32
    %c0_i32_1 = arith.constant 0 : i32
    return %arg0, %c0_i32, %c0_i32_0 : i32, i32, i32
  }
  func.func @transform_5(%arg0: i32) -> (i32, i32) {
    %c0_i32 = arith.constant 0 : i32
    %c0_i32_0 = arith.constant 0 : i32
    %c0_i32_1 = arith.constant 0 : i32
    return %c0_i32, %c0_i32_0 : i32, i32
  }
  func.func @transform_6(%arg0: i32) -> (i32, i32) {
    %c0_i32 = arith.constant 0 : i32
    %c0_i32_0 = arith.constant 0 : i32
    %c0_i32_1 = arith.constant 0 : i32
    return %c0_i32, %c0_i32_0 : i32, i32
  }
}

module attributes {stable_mosaic.version = 11 : i64} {
  func.func @_scale_shift_relu_kernel(%arg0: i32, %arg1: memref<1x8x256xf32, #tpu.memory_space<vmem>>, %arg2: memref<8x1xf32, #tpu.memory_space<vmem>>, %arg3: memref<8x1xf32, #tpu.memory_space<vmem>>, %arg4: memref<1x8x256xf32, #tpu.memory_space<vmem>>) attributes {dimension_semantics = [#tpu.dimension_semantics<parallel>], iteration_bounds = array<i64: 2>, scalar_prefetch = 0 : i64, scratch_operands = 0 : i64, tpu.core_type = #tpu.core_type<tc>, window_params = [{transform_indices = @transform_0, window_bounds = array<i64: 1, 8, 256>}, {pipeline_mode = #tpu.pipeline_mode<synchronous>, transform_indices = @transform_1, window_bounds = array<i64: 8, 1>}, {pipeline_mode = #tpu.pipeline_mode<synchronous>, transform_indices = @transform_2, window_bounds = array<i64: 8, 1>}, {transform_indices = @transform_3, window_bounds = array<i64: 1, 8, 256>}]} {
    %c0 = arith.constant 0 : index
    %c0_0 = arith.constant 0 : index
    %c0_1 = arith.constant 0 : index
    %0 = vector.load %arg1[%c0, %c0_0, %c0_1] : memref<1x8x256xf32, #tpu.memory_space<vmem>>, vector<1x8x256xf32>
    %1 = vector.shape_cast %0 : vector<1x8x256xf32> to vector<8x256xf32>
    %c0_2 = arith.constant 0 : index
    %c0_3 = arith.constant 0 : index
    %2 = vector.load %arg2[%c0_2, %c0_3] : memref<8x1xf32, #tpu.memory_space<vmem>>, vector<8x1xf32>
    %3 = vector.broadcast %2 : vector<8x1xf32> to vector<8x256xf32>
    %4 = arith.mulf %1, %3 : vector<8x256xf32>
    %c0_4 = arith.constant 0 : index
    %c0_5 = arith.constant 0 : index
    %5 = vector.load %arg3[%c0_4, %c0_5] : memref<8x1xf32, #tpu.memory_space<vmem>>, vector<8x1xf32>
    %6 = vector.broadcast %5 : vector<8x1xf32> to vector<8x256xf32>
    %7 = arith.addf %4, %6 : vector<8x256xf32>
    %cst = arith.constant 0.000000e+00 : f32
    %8 = vector.broadcast %cst : f32 to vector<8x256xf32>
    %9 = arith.maximumf %7, %8 : vector<8x256xf32>
    %c0_6 = arith.constant 0 : index
    %c0_7 = arith.constant 0 : index
    %c0_8 = arith.constant 0 : index
    %10 = vector.load %arg4[%c0_6, %c0_7, %c0_8] : memref<1x8x256xf32, #tpu.memory_space<vmem>>, vector<1x8x256xf32>
    %11 = vector.shape_cast %10 : vector<1x8x256xf32> to vector<8x256xf32>
    %12 = vector.shape_cast %9 : vector<8x256xf32> to vector<1x8x256xf32>
    tpu.vector_store %arg4[%c0_6, %c0_7, %c0_8], %12 {strides = array<i32>} : memref<1x8x256xf32, #tpu.memory_space<vmem>>, vector<1x8x256xf32>,
    return
  }
  func.func @transform_0(%arg0: i32) -> (i32, i32, i32) {
    %c0_i32 = arith.constant 0 : i32
    %c0_i32_0 = arith.constant 0 : i32
    %c0_i32_1 = arith.constant 0 : i32
    return %arg0, %c0_i32, %c0_i32_0 : i32, i32, i32
  }
  func.func @transform_1(%arg0: i32) -> (i32, i32) {
    %c0_i32 = arith.constant 0 : i32
    %c0_i32_0 = arith.constant 0 : i32
    %c0_i32_1 = arith.constant 0 : i32
    return %c0_i32, %c0_i32_0 : i32, i32
  }
  func.func @transform_2(%arg0: i32) -> (i32, i32) {
    %c0_i32 = arith.constant 0 : i32
    %c0_i32_0 = arith.constant 0 : i32
    %c0_i32_1 = arith.constant 0 : i32
    return %c0_i32, %c0_i32_0 : i32, i32
  }
  func.func @transform_3(%arg0: i32) -> (i32, i32, i32) {
    %c0_i32 = arith.constant 0 : i32
    %c0_i32_0 = arith.constant 0 : i32
    %c0_i32_1 = arith.constant 0 : i32
    return %arg0, %c0_i32, %c0_i32_0 : i32, i32, i32
  }
}

module attributes {stable_mosaic.version = 11 : i64} {
  func.func @_conv_bn_stats_kernel(%arg0: i32, %arg1: memref<1x4x256xf32, #tpu.memory_space<vmem>>, %arg2: memref<9x8x4xf32, #tpu.memory_space<vmem>>, %arg3: memref<8x1xf32, #tpu.memory_space<vmem>>, %arg4: memref<8x1xf32, #tpu.memory_space<vmem>>, %arg5: memref<4x1xf32, #tpu.memory_space<vmem>>, %arg6: memref<4x1xf32, #tpu.memory_space<vmem>>, %arg7: memref<1x8x256xf32, #tpu.memory_space<vmem>>, %arg8: memref<8x1xf32, #tpu.memory_space<vmem>>, %arg9: memref<8x1xf32, #tpu.memory_space<vmem>>, %arg10: memref<8x1xf32, #tpu.memory_space<vmem>>, %arg11: memref<8x1xf32, #tpu.memory_space<vmem>>) attributes {dimension_semantics = [#tpu.dimension_semantics<arbitrary>], iteration_bounds = array<i64: 2>, scalar_prefetch = 0 : i64, scratch_operands = 2 : i64, tpu.core_type = #tpu.core_type<tc>, window_params = [{transform_indices = @transform_0, window_bounds = array<i64: 1, 4, 256>}, {pipeline_mode = #tpu.pipeline_mode<synchronous>, transform_indices = @transform_1, window_bounds = array<i64: 9, 8, 4>}, {pipeline_mode = #tpu.pipeline_mode<synchronous>, transform_indices = @transform_2, window_bounds = array<i64: 8, 1>}, {pipeline_mode = #tpu.pipeline_mode<synchronous>, transform_indices = @transform_3, window_bounds = array<i64: 8, 1>}, {pipeline_mode = #tpu.pipeline_mode<synchronous>, transform_indices = @transform_4, window_bounds = array<i64: 4, 1>}, {pipeline_mode = #tpu.pipeline_mode<synchronous>, transform_indices = @transform_5, window_bounds = array<i64: 4, 1>}, {transform_indices = @transform_6, window_bounds = array<i64: 1, 8, 256>}, {pipeline_mode = #tpu.pipeline_mode<synchronous>, transform_indices = @transform_7, window_bounds = array<i64: 8, 1>}, {pipeline_mode = #tpu.pipeline_mode<synchronous>, transform_indices = @transform_8, window_bounds = array<i64: 8, 1>}]} {
    %c0_i32 = arith.constant 0 : i32
    %0 = arith.cmpi eq, %arg0, %c0_i32 : i32
    %1 = arith.extui %0 : i1 to i32
    %c0_i32_0 = arith.constant 0 : i32
    %2 = arith.cmpi ne, %1, %c0_i32_0 : i32
    scf.if %2 {
      %cst_72 = arith.constant 0.000000e+00 : f32
      %166 = vector.broadcast %cst_72 : f32 to vector<8x1xf32>
      %c0_73 = arith.constant 0 : index
      %c0_74 = arith.constant 0 : index
      %167 = vector.load %arg10[%c0_73, %c0_74] : memref<8x1xf32, #tpu.memory_space<vmem>>, vector<8x1xf32>
      tpu.vector_store %arg10[%c0_73, %c0_74], %166 {strides = array<i32>} : memref<8x1xf32, #tpu.memory_space<vmem>>, vector<8x1xf32>,
      %cst_75 = arith.constant 0.000000e+00 : f32
      %168 = vector.broadcast %cst_75 : f32 to vector<8x1xf32>
      %c0_76 = arith.constant 0 : index
      %c0_77 = arith.constant 0 : index
      %169 = vector.load %arg11[%c0_76, %c0_77] : memref<8x1xf32, #tpu.memory_space<vmem>>, vector<8x1xf32>
      tpu.vector_store %arg11[%c0_76, %c0_77], %168 {strides = array<i32>} : memref<8x1xf32, #tpu.memory_space<vmem>>, vector<8x1xf32>,
    } else {
    }
    %c0 = arith.constant 0 : index
    %c0_1 = arith.constant 0 : index
    %c0_2 = arith.constant 0 : index
    %3 = vector.load %arg1[%c0, %c0_1, %c0_2] : memref<1x4x256xf32, #tpu.memory_space<vmem>>, vector<1x4x256xf32>
    %4 = vector.shape_cast %3 : vector<1x4x256xf32> to vector<4x256xf32>
    %c0_3 = arith.constant 0 : index
    %c0_4 = arith.constant 0 : index
    %5 = vector.load %arg5[%c0_3, %c0_4] : memref<4x1xf32, #tpu.memory_space<vmem>>, vector<4x1xf32>
    %6 = vector.broadcast %5 : vector<4x1xf32> to vector<4x256xf32>
    %7 = arith.mulf %4, %6 : vector<4x256xf32>
    %c0_5 = arith.constant 0 : index
    %c0_6 = arith.constant 0 : index
    %8 = vector.load %arg6[%c0_5, %c0_6] : memref<4x1xf32, #tpu.memory_space<vmem>>, vector<4x1xf32>
    %9 = vector.broadcast %8 : vector<4x1xf32> to vector<4x256xf32>
    %10 = arith.addf %7, %9 : vector<4x256xf32>
    %cst = arith.constant 0.000000e+00 : f32
    %11 = vector.broadcast %cst : f32 to vector<4x256xf32>
    %12 = arith.maximumf %10, %11 : vector<4x256xf32>
    %13 = tpu.iota {dimensions = array<i32: 1>} : vector<1x256xi32>
    %c16_i32 = arith.constant 16 : i32
    %c0_i32_7 = arith.constant 0 : i32
    %14 = arith.cmpi eq, %c16_i32, %c0_i32_7 : i32
    %c1_i32 = arith.constant 1 : i32
    %15 = arith.select %14, %c1_i32, %c16_i32 : i32
    %16 = vector.broadcast %15 : i32 to vector<1x256xi32>
    %17 = arith.remsi %13, %16 : vector<1x256xi32>
    %c0_i32_8 = arith.constant 0 : i32
    %18 = vector.broadcast %c0_i32_8 : i32 to vector<1x256xi32>
    %19 = arith.cmpi ne, %17, %18 : vector<1x256xi32>
    %c0_i32_9 = arith.constant 0 : i32
    %20 = vector.broadcast %c0_i32_9 : i32 to vector<1x256xi32>
    %21 = arith.cmpi slt, %17, %20 : vector<1x256xi32>
    %c0_i32_10 = arith.constant 0 : i32
    %22 = arith.cmpi slt, %15, %c0_i32_10 : i32
    %23 = vector.broadcast %22 : i1 to vector<1x256xi1>
    %24 = vector.broadcast %23 : vector<1x256xi1> to vector<1x256xi1>
    %25 = arith.xori %21, %24 : vector<1x256xi1>
    %26 = arith.andi %25, %19 : vector<1x256xi1>
    %27 = vector.broadcast %15 : i32 to vector<1x256xi32>
    %28 = arith.addi %17, %27 : vector<1x256xi32>
    %29 = arith.select %26, %28, %17 : vector<1x256xi1>, vector<1x256xi32>
    %30 = vector.extract_strided_slice %12 {offsets = [0, 239], sizes = [4, 17], strides = [1, 1]} : vector<4x256xf32> to vector<4x17xf32>
    %31 = vector.extract_strided_slice %12 {offsets = [0, 0], sizes = [4, 239], strides = [1, 1]} : vector<4x256xf32> to vector<4x239xf32>
    %32 = tpu.concatenate %30, %31 in 1 : vector<4x17xf32>, vector<4x239xf32> -> vector<4x256xf32>
    %c16_i32_11 = arith.constant 16 : i32
    %33 = vector.broadcast %c16_i32_11 : i32 to vector<1x256xi32>
    %34 = arith.cmpi sge, %13, %33 : vector<1x256xi32>
    %c1_i32_12 = arith.constant 1 : i32
    %35 = vector.broadcast %c1_i32_12 : i32 to vector<1x256xi32>
    %36 = arith.cmpi sge, %29, %35 : vector<1x256xi32>
    %37 = arith.andi %34, %36 : vector<1x256xi1>
    %cst_13 = arith.constant 0.000000e+00 : f32
    %38 = vector.broadcast %cst_13 : f32 to vector<4x256xf32>
    %39 = vector.shape_cast %37 : vector<1x256xi1> to vector<1x256xi1>
    %40 = vector.broadcast %39 : vector<1x256xi1> to vector<4x256xi1>
    %41 = arith.select %40, %32, %38 : vector<4x256xi1>, vector<4x256xf32>
    %c0_14 = arith.constant 0 : index
    %c0_15 = arith.constant 0 : index
    %c0_16 = arith.constant 0 : index
    %42 = vector.load %arg2[%c0_14, %c0_15, %c0_16] : memref<9x8x4xf32, #tpu.memory_space<vmem>>, vector<1x8x4xf32>
    %43 = vector.shape_cast %42 : vector<1x8x4xf32> to vector<8x4xf32>
    %cst_17 = arith.constant dense<0.000000e+00> : vector<8x256xf32>
    %44 = tpu.matmul %43, %41, %cst_17 {dimension_numbers = #tpu.dot_dimension_numbers<[1], [0], [0], [1], [0, 0, 1, 1], [], []>} : vector<8x4xf32>, vector<4x256xf32>, vector<8x256xf32> -> vector<8x256xf32>
    %45 = vector.extract_strided_slice %12 {offsets = [0, 240], sizes = [4, 16], strides = [1, 1]} : vector<4x256xf32> to vector<4x16xf32>
    %46 = vector.extract_strided_slice %12 {offsets = [0, 0], sizes = [4, 240], strides = [1, 1]} : vector<4x256xf32> to vector<4x240xf32>
    %47 = tpu.concatenate %45, %46 in 1 : vector<4x16xf32>, vector<4x240xf32> -> vector<4x256xf32>
    %c16_i32_18 = arith.constant 16 : i32
    %48 = vector.broadcast %c16_i32_18 : i32 to vector<1x256xi32>
    %49 = arith.cmpi sge, %13, %48 : vector<1x256xi32>
    %cst_19 = arith.constant 0.000000e+00 : f32
    %50 = vector.broadcast %cst_19 : f32 to vector<4x256xf32>
    %51 = vector.shape_cast %49 : vector<1x256xi1> to vector<1x256xi1>
    %52 = vector.broadcast %51 : vector<1x256xi1> to vector<4x256xi1>
    %53 = arith.select %52, %47, %50 : vector<4x256xi1>, vector<4x256xf32>
    %c1 = arith.constant 1 : index
    %c0_20 = arith.constant 0 : index
    %c0_21 = arith.constant 0 : index
    %54 = vector.load %arg2[%c1, %c0_20, %c0_21] : memref<9x8x4xf32, #tpu.memory_space<vmem>>, vector<1x8x4xf32>
    %55 = vector.shape_cast %54 : vector<1x8x4xf32> to vector<8x4xf32>
    %cst_22 = arith.constant dense<0.000000e+00> : vector<8x256xf32>
    %56 = tpu.matmul %55, %53, %cst_22 {dimension_numbers = #tpu.dot_dimension_numbers<[1], [0], [0], [1], [0, 0, 1, 1], [], []>} : vector<8x4xf32>, vector<4x256xf32>, vector<8x256xf32> -> vector<8x256xf32>
    %57 = arith.addf %44, %56 : vector<8x256xf32>
    %58 = vector.extract_strided_slice %12 {offsets = [0, 241], sizes = [4, 15], strides = [1, 1]} : vector<4x256xf32> to vector<4x15xf32>
    %59 = vector.extract_strided_slice %12 {offsets = [0, 0], sizes = [4, 241], strides = [1, 1]} : vector<4x256xf32> to vector<4x241xf32>
    %60 = tpu.concatenate %58, %59 in 1 : vector<4x15xf32>, vector<4x241xf32> -> vector<4x256xf32>
    %c16_i32_23 = arith.constant 16 : i32
    %61 = vector.broadcast %c16_i32_23 : i32 to vector<1x256xi32>
    %62 = arith.cmpi sge, %13, %61 : vector<1x256xi32>
    %c15_i32 = arith.constant 15 : i32
    %63 = vector.broadcast %c15_i32 : i32 to vector<1x256xi32>
    %64 = arith.cmpi slt, %29, %63 : vector<1x256xi32>
    %65 = arith.andi %62, %64 : vector<1x256xi1>
    %cst_24 = arith.constant 0.000000e+00 : f32
    %66 = vector.broadcast %cst_24 : f32 to vector<4x256xf32>
    %67 = vector.shape_cast %65 : vector<1x256xi1> to vector<1x256xi1>
    %68 = vector.broadcast %67 : vector<1x256xi1> to vector<4x256xi1>
    %69 = arith.select %68, %60, %66 : vector<4x256xi1>, vector<4x256xf32>
    %c2 = arith.constant 2 : index
    %c0_25 = arith.constant 0 : index
    %c0_26 = arith.constant 0 : index
    %70 = vector.load %arg2[%c2, %c0_25, %c0_26] : memref<9x8x4xf32, #tpu.memory_space<vmem>>, vector<1x8x4xf32>
    %71 = vector.shape_cast %70 : vector<1x8x4xf32> to vector<8x4xf32>
    %cst_27 = arith.constant dense<0.000000e+00> : vector<8x256xf32>
    %72 = tpu.matmul %71, %69, %cst_27 {dimension_numbers = #tpu.dot_dimension_numbers<[1], [0], [0], [1], [0, 0, 1, 1], [], []>} : vector<8x4xf32>, vector<4x256xf32>, vector<8x256xf32> -> vector<8x256xf32>
    %73 = arith.addf %57, %72 : vector<8x256xf32>
    %74 = vector.extract_strided_slice %12 {offsets = [0, 255], sizes = [4, 1], strides = [1, 1]} : vector<4x256xf32> to vector<4x1xf32>
    %75 = vector.extract_strided_slice %12 {offsets = [0, 0], sizes = [4, 255], strides = [1, 1]} : vector<4x256xf32> to vector<4x255xf32>
    %76 = tpu.concatenate %74, %75 in 1 : vector<4x1xf32>, vector<4x255xf32> -> vector<4x256xf32>
    %c1_i32_28 = arith.constant 1 : i32
    %77 = vector.broadcast %c1_i32_28 : i32 to vector<1x256xi32>
    %78 = arith.cmpi sge, %29, %77 : vector<1x256xi32>
    %cst_29 = arith.constant 0.000000e+00 : f32
    %79 = vector.broadcast %cst_29 : f32 to vector<4x256xf32>
    %80 = vector.shape_cast %78 : vector<1x256xi1> to vector<1x256xi1>
    %81 = vector.broadcast %80 : vector<1x256xi1> to vector<4x256xi1>
    %82 = arith.select %81, %76, %79 : vector<4x256xi1>, vector<4x256xf32>
    %c3 = arith.constant 3 : index
    %c0_30 = arith.constant 0 : index
    %c0_31 = arith.constant 0 : index
    %83 = vector.load %arg2[%c3, %c0_30, %c0_31] : memref<9x8x4xf32, #tpu.memory_space<vmem>>, vector<1x8x4xf32>
    %84 = vector.shape_cast %83 : vector<1x8x4xf32> to vector<8x4xf32>
    %cst_32 = arith.constant dense<0.000000e+00> : vector<8x256xf32>
    %85 = tpu.matmul %84, %82, %cst_32 {dimension_numbers = #tpu.dot_dimension_numbers<[1], [0], [0], [1], [0, 0, 1, 1], [], []>} : vector<8x4xf32>, vector<4x256xf32>, vector<8x256xf32> -> vector<8x256xf32>
    %86 = arith.addf %73, %85 : vector<8x256xf32>
    %c4 = arith.constant 4 : index
    %c0_33 = arith.constant 0 : index
    %c0_34 = arith.constant 0 : index
    %87 = vector.load %arg2[%c4, %c0_33, %c0_34] : memref<9x8x4xf32, #tpu.memory_space<vmem>>, vector<1x8x4xf32>
    %88 = vector.shape_cast %87 : vector<1x8x4xf32> to vector<8x4xf32>
    %cst_35 = arith.constant dense<0.000000e+00> : vector<8x256xf32>
    %89 = tpu.matmul %88, %12, %cst_35 {dimension_numbers = #tpu.dot_dimension_numbers<[1], [0], [0], [1], [0, 0, 1, 1], [], []>} : vector<8x4xf32>, vector<4x256xf32>, vector<8x256xf32> -> vector<8x256xf32>
    %90 = arith.addf %86, %89 : vector<8x256xf32>
    %91 = vector.extract_strided_slice %12 {offsets = [0, 1], sizes = [4, 255], strides = [1, 1]} : vector<4x256xf32> to vector<4x255xf32>
    %92 = vector.extract_strided_slice %12 {offsets = [0, 0], sizes = [4, 1], strides = [1, 1]} : vector<4x256xf32> to vector<4x1xf32>
    %93 = tpu.concatenate %91, %92 in 1 : vector<4x255xf32>, vector<4x1xf32> -> vector<4x256xf32>
    %c15_i32_36 = arith.constant 15 : i32
    %94 = vector.broadcast %c15_i32_36 : i32 to vector<1x256xi32>
    %95 = arith.cmpi slt, %29, %94 : vector<1x256xi32>
    %cst_37 = arith.constant 0.000000e+00 : f32
    %96 = vector.broadcast %cst_37 : f32 to vector<4x256xf32>
    %97 = vector.shape_cast %95 : vector<1x256xi1> to vector<1x256xi1>
    %98 = vector.broadcast %97 : vector<1x256xi1> to vector<4x256xi1>
    %99 = arith.select %98, %93, %96 : vector<4x256xi1>, vector<4x256xf32>
    %c5 = arith.constant 5 : index
    %c0_38 = arith.constant 0 : index
    %c0_39 = arith.constant 0 : index
    %100 = vector.load %arg2[%c5, %c0_38, %c0_39] : memref<9x8x4xf32, #tpu.memory_space<vmem>>, vector<1x8x4xf32>
    %101 = vector.shape_cast %100 : vector<1x8x4xf32> to vector<8x4xf32>
    %cst_40 = arith.constant dense<0.000000e+00> : vector<8x256xf32>
    %102 = tpu.matmul %101, %99, %cst_40 {dimension_numbers = #tpu.dot_dimension_numbers<[1], [0], [0], [1], [0, 0, 1, 1], [], []>} : vector<8x4xf32>, vector<4x256xf32>, vector<8x256xf32> -> vector<8x256xf32>
    %103 = arith.addf %90, %102 : vector<8x256xf32>
    %104 = vector.extract_strided_slice %12 {offsets = [0, 15], sizes = [4, 241], strides = [1, 1]} : vector<4x256xf32> to vector<4x241xf32>
    %105 = vector.extract_strided_slice %12 {offsets = [0, 0], sizes = [4, 15], strides = [1, 1]} : vector<4x256xf32> to vector<4x15xf32>
    %106 = tpu.concatenate %104, %105 in 1 : vector<4x241xf32>, vector<4x15xf32> -> vector<4x256xf32>
    %c240_i32 = arith.constant 240 : i32
    %107 = vector.broadcast %c240_i32 : i32 to vector<1x256xi32>
    %108 = arith.cmpi slt, %13, %107 : vector<1x256xi32>
    %c1_i32_41 = arith.constant 1 : i32
    %109 = vector.broadcast %c1_i32_41 : i32 to vector<1x256xi32>
    %110 = arith.cmpi sge, %29, %109 : vector<1x256xi32>
    %111 = arith.andi %108, %110 : vector<1x256xi1>
    %cst_42 = arith.constant 0.000000e+00 : f32
    %112 = vector.broadcast %cst_42 : f32 to vector<4x256xf32>
    %113 = vector.shape_cast %111 : vector<1x256xi1> to vector<1x256xi1>
    %114 = vector.broadcast %113 : vector<1x256xi1> to vector<4x256xi1>
    %115 = arith.select %114, %106, %112 : vector<4x256xi1>, vector<4x256xf32>
    %c6 = arith.constant 6 : index
    %c0_43 = arith.constant 0 : index
    %c0_44 = arith.constant 0 : index
    %116 = vector.load %arg2[%c6, %c0_43, %c0_44] : memref<9x8x4xf32, #tpu.memory_space<vmem>>, vector<1x8x4xf32>
    %117 = vector.shape_cast %116 : vector<1x8x4xf32> to vector<8x4xf32>
    %cst_45 = arith.constant dense<0.000000e+00> : vector<8x256xf32>
    %118 = tpu.matmul %117, %115, %cst_45 {dimension_numbers = #tpu.dot_dimension_numbers<[1], [0], [0], [1], [0, 0, 1, 1], [], []>} : vector<8x4xf32>, vector<4x256xf32>, vector<8x256xf32> -> vector<8x256xf32>
    %119 = arith.addf %103, %118 : vector<8x256xf32>
    %120 = vector.extract_strided_slice %12 {offsets = [0, 16], sizes = [4, 240], strides = [1, 1]} : vector<4x256xf32> to vector<4x240xf32>
    %121 = vector.extract_strided_slice %12 {offsets = [0, 0], sizes = [4, 16], strides = [1, 1]} : vector<4x256xf32> to vector<4x16xf32>
    %122 = tpu.concatenate %120, %121 in 1 : vector<4x240xf32>, vector<4x16xf32> -> vector<4x256xf32>
    %c240_i32_46 = arith.constant 240 : i32
    %123 = vector.broadcast %c240_i32_46 : i32 to vector<1x256xi32>
    %124 = arith.cmpi slt, %13, %123 : vector<1x256xi32>
    %cst_47 = arith.constant 0.000000e+00 : f32
    %125 = vector.broadcast %cst_47 : f32 to vector<4x256xf32>
    %126 = vector.shape_cast %124 : vector<1x256xi1> to vector<1x256xi1>
    %127 = vector.broadcast %126 : vector<1x256xi1> to vector<4x256xi1>
    %128 = arith.select %127, %122, %125 : vector<4x256xi1>, vector<4x256xf32>
    %c7 = arith.constant 7 : index
    %c0_48 = arith.constant 0 : index
    %c0_49 = arith.constant 0 : index
    %129 = vector.load %arg2[%c7, %c0_48, %c0_49] : memref<9x8x4xf32, #tpu.memory_space<vmem>>, vector<1x8x4xf32>
    %130 = vector.shape_cast %129 : vector<1x8x4xf32> to vector<8x4xf32>
    %cst_50 = arith.constant dense<0.000000e+00> : vector<8x256xf32>
    %131 = tpu.matmul %130, %128, %cst_50 {dimension_numbers = #tpu.dot_dimension_numbers<[1], [0], [0], [1], [0, 0, 1, 1], [], []>} : vector<8x4xf32>, vector<4x256xf32>, vector<8x256xf32> -> vector<8x256xf32>
    %132 = arith.addf %119, %131 : vector<8x256xf32>
    %133 = vector.extract_strided_slice %12 {offsets = [0, 17], sizes = [4, 239], strides = [1, 1]} : vector<4x256xf32> to vector<4x239xf32>
    %134 = vector.extract_strided_slice %12 {offsets = [0, 0], sizes = [4, 17], strides = [1, 1]} : vector<4x256xf32> to vector<4x17xf32>
    %135 = tpu.concatenate %133, %134 in 1 : vector<4x239xf32>, vector<4x17xf32> -> vector<4x256xf32>
    %c240_i32_51 = arith.constant 240 : i32
    %136 = vector.broadcast %c240_i32_51 : i32 to vector<1x256xi32>
    %137 = arith.cmpi slt, %13, %136 : vector<1x256xi32>
    %c15_i32_52 = arith.constant 15 : i32
    %138 = vector.broadcast %c15_i32_52 : i32 to vector<1x256xi32>
    %139 = arith.cmpi slt, %29, %138 : vector<1x256xi32>
    %140 = arith.andi %137, %139 : vector<1x256xi1>
    %cst_53 = arith.constant 0.000000e+00 : f32
    %141 = vector.broadcast %cst_53 : f32 to vector<4x256xf32>
    %142 = vector.shape_cast %140 : vector<1x256xi1> to vector<1x256xi1>
    %143 = vector.broadcast %142 : vector<1x256xi1> to vector<4x256xi1>
    %144 = arith.select %143, %135, %141 : vector<4x256xi1>, vector<4x256xf32>
    %c8 = arith.constant 8 : index
    %c0_54 = arith.constant 0 : index
    %c0_55 = arith.constant 0 : index
    %145 = vector.load %arg2[%c8, %c0_54, %c0_55] : memref<9x8x4xf32, #tpu.memory_space<vmem>>, vector<1x8x4xf32>
    %146 = vector.shape_cast %145 : vector<1x8x4xf32> to vector<8x4xf32>
    %cst_56 = arith.constant dense<0.000000e+00> : vector<8x256xf32>
    %147 = tpu.matmul %146, %144, %cst_56 {dimension_numbers = #tpu.dot_dimension_numbers<[1], [0], [0], [1], [0, 0, 1, 1], [], []>} : vector<8x4xf32>, vector<4x256xf32>, vector<8x256xf32> -> vector<8x256xf32>
    %148 = arith.addf %132, %147 : vector<8x256xf32>
    %c0_57 = arith.constant 0 : index
    %c0_58 = arith.constant 0 : index
    %149 = vector.load %arg10[%c0_57, %c0_58] : memref<8x1xf32, #tpu.memory_space<vmem>>, vector<8x1xf32>
    %cst_59 = arith.constant dense<0.000000e+00> : vector<8xf32>
    %150 = vector.multi_reduction <add>, %148, %cst_59 [1] : vector<8x256xf32> to vector<8xf32>
    %151 = vector.shape_cast %150 : vector<8xf32> to vector<8x1xf32>
    %152 = arith.addf %149, %151 : vector<8x1xf32>
    %c0_60 = arith.constant 0 : index
    %c0_61 = arith.constant 0 : index
    %153 = vector.load %arg10[%c0_60, %c0_61] : memref<8x1xf32, #tpu.memory_space<vmem>>, vector<8x1xf32>
    tpu.vector_store %arg10[%c0_60, %c0_61], %152 {strides = array<i32>} : memref<8x1xf32, #tpu.memory_space<vmem>>, vector<8x1xf32>,
    %c0_62 = arith.constant 0 : index
    %c0_63 = arith.constant 0 : index
    %154 = vector.load %arg11[%c0_62, %c0_63] : memref<8x1xf32, #tpu.memory_space<vmem>>, vector<8x1xf32>
    %155 = arith.mulf %148, %148 : vector<8x256xf32>
    %cst_64 = arith.constant dense<0.000000e+00> : vector<8xf32>
    %156 = vector.multi_reduction <add>, %155, %cst_64 [1] : vector<8x256xf32> to vector<8xf32>
    %157 = vector.shape_cast %156 : vector<8xf32> to vector<8x1xf32>
    %158 = arith.addf %154, %157 : vector<8x1xf32>
    %c0_65 = arith.constant 0 : index
    %c0_66 = arith.constant 0 : index
    %159 = vector.load %arg11[%c0_65, %c0_66] : memref<8x1xf32, #tpu.memory_space<vmem>>, vector<8x1xf32>
    tpu.vector_store %arg11[%c0_65, %c0_66], %158 {strides = array<i32>} : memref<8x1xf32, #tpu.memory_space<vmem>>, vector<8x1xf32>,
    %c0_67 = arith.constant 0 : index
    %c0_68 = arith.constant 0 : index
    %c0_69 = arith.constant 0 : index
    %160 = vector.load %arg7[%c0_67, %c0_68, %c0_69] : memref<1x8x256xf32, #tpu.memory_space<vmem>>, vector<1x8x256xf32>
    %161 = vector.shape_cast %160 : vector<1x8x256xf32> to vector<8x256xf32>
    %162 = vector.shape_cast %148 : vector<8x256xf32> to vector<1x8x256xf32>
    tpu.vector_store %arg7[%c0_67, %c0_68, %c0_69], %162 {strides = array<i32>} : memref<1x8x256xf32, #tpu.memory_space<vmem>>, vector<1x8x256xf32>,
    %c1_i32_70 = arith.constant 1 : i32
    %163 = arith.cmpi eq, %arg0, %c1_i32_70 : i32
    %164 = arith.extui %163 : i1 to i32
    %c0_i32_71 = arith.constant 0 : i32
    %165 = arith.cmpi ne, %164, %c0_i32_71 : i32
    scf.if %165 {
      %c0_72 = arith.constant 0 : index
      %c0_73 = arith.constant 0 : index
      %166 = vector.load %arg10[%c0_72, %c0_73] : memref<8x1xf32, #tpu.memory_space<vmem>>, vector<8x1xf32>
      %cst_74 = arith.constant 0.001953125 : f32
      %167 = vector.broadcast %cst_74 : f32 to vector<8x1xf32>
      %168 = arith.mulf %166, %167 : vector<8x1xf32>
      %c0_75 = arith.constant 0 : index
      %c0_76 = arith.constant 0 : index
      %169 = vector.load %arg11[%c0_75, %c0_76] : memref<8x1xf32, #tpu.memory_space<vmem>>, vector<8x1xf32>
      %cst_77 = arith.constant 0.001953125 : f32
      %170 = vector.broadcast %cst_77 : f32 to vector<8x1xf32>
      %171 = arith.mulf %169, %170 : vector<8x1xf32>
      %172 = arith.mulf %168, %168 : vector<8x1xf32>
      %173 = arith.subf %171, %172 : vector<8x1xf32>
      %cst_78 = arith.constant 0.000000e+00 : f32
      %174 = vector.broadcast %cst_78 : f32 to vector<8x1xf32>
      %175 = arith.maximumf %173, %174 : vector<8x1xf32>
      %c0_79 = arith.constant 0 : index
      %c0_80 = arith.constant 0 : index
      %176 = vector.load %arg3[%c0_79, %c0_80] : memref<8x1xf32, #tpu.memory_space<vmem>>, vector<8x1xf32>
      %cst_81 = arith.constant 9.99999974E-6 : f32
      %177 = vector.broadcast %cst_81 : f32 to vector<8x1xf32>
      %178 = arith.addf %175, %177 : vector<8x1xf32>
      %179 = math.rsqrt %178 : vector<8x1xf32>
      %180 = arith.mulf %176, %179 : vector<8x1xf32>
      %c0_82 = arith.constant 0 : index
      %c0_83 = arith.constant 0 : index
      %181 = vector.load %arg8[%c0_82, %c0_83] : memref<8x1xf32, #tpu.memory_space<vmem>>, vector<8x1xf32>
      tpu.vector_store %arg8[%c0_82, %c0_83], %180 {strides = array<i32>} : memref<8x1xf32, #tpu.memory_space<vmem>>, vector<8x1xf32>,
      %c0_84 = arith.constant 0 : index
      %c0_85 = arith.constant 0 : index
      %182 = vector.load %arg4[%c0_84, %c0_85] : memref<8x1xf32, #tpu.memory_space<vmem>>, vector<8x1xf32>
      %183 = arith.mulf %168, %180 : vector<8x1xf32>
      %184 = arith.subf %182, %183 : vector<8x1xf32>
      %c0_86 = arith.constant 0 : index
      %c0_87 = arith.constant 0 : index
      %185 = vector.load %arg9[%c0_86, %c0_87] : memref<8x1xf32, #tpu.memory_space<vmem>>, vector<8x1xf32>
      tpu.vector_store %arg9[%c0_86, %c0_87], %184 {strides = array<i32>} : memref<8x1xf32, #tpu.memory_space<vmem>>, vector<8x1xf32>,
    } else {
    }
    return
  }
  func.func @transform_0(%arg0: i32) -> (i32, i32, i32) {
    %c0_i32 = arith.constant 0 : i32
    %c0_i32_0 = arith.constant 0 : i32
    %c0_i32_1 = arith.constant 0 : i32
    return %arg0, %c0_i32, %c0_i32_0 : i32, i32, i32
  }
  func.func @transform_1(%arg0: i32) -> (i32, i32, i32) {
    %c0_i32 = arith.constant 0 : i32
    %c0_i32_0 = arith.constant 0 : i32
    %c0_i32_1 = arith.constant 0 : i32
    %c0_i32_2 = arith.constant 0 : i32
    return %c0_i32, %c0_i32_0, %c0_i32_1 : i32, i32, i32
  }
  func.func @transform_2(%arg0: i32) -> (i32, i32) {
    %c0_i32 = arith.constant 0 : i32
    %c0_i32_0 = arith.constant 0 : i32
    %c0_i32_1 = arith.constant 0 : i32
    return %c0_i32, %c0_i32_0 : i32, i32
  }
  func.func @transform_3(%arg0: i32) -> (i32, i32) {
    %c0_i32 = arith.constant 0 : i32
    %c0_i32_0 = arith.constant 0 : i32
    %c0_i32_1 = arith.constant 0 : i32
    return %c0_i32, %c0_i32_0 : i32, i32
  }
  func.func @transform_4(%arg0: i32) -> (i32, i32) {
    %c0_i32 = arith.constant 0 : i32
    %c0_i32_0 = arith.constant 0 : i32
    %c0_i32_1 = arith.constant 0 : i32
    return %c0_i32, %c0_i32_0 : i32, i32
  }
  func.func @transform_5(%arg0: i32) -> (i32, i32) {
    %c0_i32 = arith.constant 0 : i32
    %c0_i32_0 = arith.constant 0 : i32
    %c0_i32_1 = arith.constant 0 : i32
    return %c0_i32, %c0_i32_0 : i32, i32
  }
  func.func @transform_6(%arg0: i32) -> (i32, i32, i32) {
    %c0_i32 = arith.constant 0 : i32
    %c0_i32_0 = arith.constant 0 : i32
    %c0_i32_1 = arith.constant 0 : i32
    return %arg0, %c0_i32, %c0_i32_0 : i32, i32, i32
  }
  func.func @transform_7(%arg0: i32) -> (i32, i32) {
    %c0_i32 = arith.constant 0 : i32
    %c0_i32_0 = arith.constant 0 : i32
    %c0_i32_1 = arith.constant 0 : i32
    return %c0_i32, %c0_i32_0 : i32, i32
  }
  func.func @transform_8(%arg0: i32) -> (i32, i32) {
    %c0_i32 = arith.constant 0 : i32
    %c0_i32_0 = arith.constant 0 : i32
    %c0_i32_1 = arith.constant 0 : i32
    return %c0_i32, %c0_i32_0 : i32, i32
  }
}

</mosaic_0001>

<bundles_post_ra>
// kernel: decode_block.5
= control target key start
LH: loop header
LB: loop body
LE: loop exit
PB: predicated region body
PF: predicated region fallthrough
CT: control target
= control target key end

     0   :  { %s300_s12 = smov 0   ;;  %s323_s0 = inlined_call_operand.vmem [shape: f32[2,8,256], index: 0, kind: input, shape index: {}]   ;;  %s324_s1 = inlined_call_operand.vmem [shape: f32[8,1], index: 1, kind: input, shape index: {}]   ;;  %s325_s2 = inlined_call_operand.vmem [shape: f32[8,1], index: 2, kind: input, shape index: {}]   ;;  %s326_s3 = inlined_call_operand.vmem [shape: f32[2,8,256], index: 3, kind: output, shape index: {}]  }
   0x1 LB: > { %s248_s13 = sadd.s32 4294967295, %s277_s12   ;;  %p252_p0 = scmp.ge.s32.totalorder %s277_s12, 1  ;;  %s277_s12 = sphi %s300_s12, %s13_s12  }
   0x2   : > { %p137_p1 = scmp.lt.s32.totalorder %s277_s12, 3 }
   0x4   : > { %p138_p2 = pnand %p252_p0, %p137_p1 }
   0x5   : > { %v173_v0 = vld [vmem:[%s324_s1] sm:$0xff] (!%p138_p2)  ;;  %v279_v1 = vmov (!%p138_p2), 0   ;;  %p161_p3 = scmp.lt.s32.totalorder (!%p138_p2), %s248_s13, 1 }
   0x6   : > { %141 = sbr.rel (%p138_p2) target bundleno = 144 (0x90), region = 32  ;;  %270 = vset.pattern.permute.xlu0 (!%p138_p2), %v279_v1  ;;  %v181_v2 = vld [vmem:[%s325_s2] sm:$0xff] (!%p138_p2) }
   0x7   : > { %176 = vperm.xlu0 (!%p138_p2), %270, %v173_v0  }
   0xb   : > { %184 = vperm.xlu0 (!%p138_p2), %270, %v181_v2  }
   0xd   : > { %s328_s13 = smov (!%p161_p3, %s248_s13), 1 }
   0xe   : > { %s259_s18 = sshll.u32 %s328_s13, 4 }
   0xf   : > { %s165_s21 = scalar_lea.vmem %s323_s0, %s259_s18  ;;  %s170_s24 = scalar_lea.vmem %s326_s3, %s259_s18 }
  0x10   : > { %v171_v4 = vld [vmem:[%s165_s21] sm:$0xff]  ;;  %v172_v5 = vld [vmem:[%s165_s21 + $0x8] sm:$0xff] }
  0x86   : > { %v177_v3 = vpop.permute.xlu0 %176 }
  0x87   : > { %v179_v6 = vmul.f32 %v177_v3, %v171_v4  ;;  %v180_v7 = vmul.f32 %v177_v3, %v172_v5 }
  0x8a   : > { %v185_v8 = vpop.permute.xlu0 %184 }
  0x8b   : > { %v187_v9 = vadd.f32 %v185_v8, %v179_v6  ;;  %v188_v10 = vadd.f32 %v185_v8, %v180_v7 }
  0x8d   : > { %v189_v11 = vmax.f32 %v187_v9, 0.0  ;;  %v190_v12 = vmax.f32 %v188_v10, 0.0 }
  0x8f   : > { %191 = vst [vmem:[%s170_s24] sm:$0xff] %v189_v11  ;;  %192 = vst [vmem:[%s170_s24 + $0x8] sm:$0xff] %v190_v12 }
  0x90 PF: > { %s13_s12 = sadd.s32 1, %s277_s12  }
  0x91   : > { %p10_p4 = scmp.ge.s32.totalorder %s13_s12, 4  }
  0x93   :  { %12 = sbr.rel (!%p10_p4) target bundleno = 1 (0x1), region = 62 }

// kernel: decode_block.3
= control target key start
LH: loop header
LB: loop body
LE: loop exit
PB: predicated region body
PF: predicated region fallthrough
CT: control target
= control target key end

     0   :  { %s1430_s21 = smov 0   ;;  %s1604_s0 = inlined_call_operand.vmem [shape: f32[2,4,256], index: 0, kind: input, shape index: {}]   ;;  %s1605_s1 = inlined_call_operand.vmem [shape: f32[9,4,4], index: 1, kind: input, shape index: {}]   ;;  %s1606_s2 = inlined_call_operand.vmem [shape: f32[4,1], index: 2, kind: input, shape index: {}]   ;;  %s1607_s3 = inlined_call_operand.vmem [shape: f32[4,1], index: 3, kind: input, shape index: {}]   ;;  %s1608_s4 = inlined_call_operand.vmem [shape: f32[2,4,256], index: 4, kind: output, shape index: {0}]   ;;  %s1609_s5 = inlined_call_operand.vmem [shape: f32[4,1], index: 5, kind: output, shape index: {1}]   ;;  %s1610_s6 = inlined_call_operand.vmem [shape: f32[4,1], index: 6, kind: output, shape index: {2}]  }
   0x1 LB: > { %s1436_s22 = sadd.s32 4294967295, %s1383_s21   ;;  %p1294_p0 = scmp.ge.s32.totalorder %s1383_s21, 1  ;;  %s1383_s21 = sphi %s1430_s21, %s17_s21  }
   0x2   : > { %p207_p1 = scmp.lt.s32.totalorder %s1383_s21, 3 }
   0x4   : > { %p208_p2 = pnand %p1294_p0, %p207_p1 }
   0x5   : > { %p237_p3 = scmp.lt.s32.totalorder (!%p208_p2), %s1436_s22, 1  ;;  %p1299_p4 = scmp.ne.s32.totalorder (!%p208_p2), %s1436_s22, 0 }
   0x6   : > { %211 = sbr.rel (%p208_p2) target bundleno = 569 (0x239), region = 36 }
   0xd   : > { %s238_s23 = scalar_select %p237_p3, %s1436_s22, 1 }
   0xe   : > { %250 = sbr.rel (%p1299_p4) target bundleno = 21 (0x15), region = 40  ;;  %vm251_vm0 = vcmask (!%p1299_p4), 3072   ;;  %v1385_v0 = vmov (!%p1299_p4), 0.0  }
   0xf   : > { %s1338_s24 = sshll.u32 %s238_s23, 3  ;;  %252 = vst.msk [vmem:[#allocation2] sm:$0xf] (!%p1299_p4), %vm251_vm0, %v1385_v0  ;;  %253 = vst.msk [vmem:[#allocation3] sm:$0xf] (!%p1299_p4), %vm251_vm0, %v1385_v0 }
  0x10   : > { %s241_s27 = scalar_lea.vmem %s1604_s0, %s1338_s24  ;;  %s1448_s30 = scalar_lea.vmem %s1608_s4, %s1338_s24 }
  0x15 PF: > { %v254_v1 = vld [vmem:[%s241_s27] sm:$0xff]  ;;  %vm329_vm1 = vcmask 1043456   ;;  %s1386_s7 = smov 127   ;;  %v1387_v3 = vmov 0.0   ;;  %vm325_vm2 = vcmask 31744   ;;  %s1388_s10 = smov 16   ;;  %v255_v5 = vlaneseq }
  0x16   : > { %773 = vrot.lane.b32.xlu0 %v254_v1, %s1386_s7  ;;  %v283_v2 = vcombine.high %v254_v1, %v254_v1  ;;  %764 = vmatprep.mubr.f32.mxu0 %v1387_v3  ;;  %v1315_v4 = vld [vmem:[%s1605_s1 + $0x10] sm:$0xf]  ;;  %s1389_s11 = smov 17   ;;  %s1390_s12 = smov 113   ;;  %vm777_vm3 = vcmask 1039360   ;;  %vm312_vm6 = vcmask 130048  }
  0x17   : > { %400 = vmatprep.mubr.f32.mxu1 %v1387_v3  ;;  %s1391_s13 = smov 15   ;;  %s1392_s14 = smov 112   ;;  %v256_v6 = vand.u32 127, %v255_v5  ;;  %v1319_v21 = vld [vmem:[%s1605_s1 + $0x14] sm:$0xf]  ;;  %vm289_vm9 = vcmask 138240  }
  0x18   : > { %307 = vrot.lane.b32.xlu1 %v283_v2, %s1388_s10  ;;  %1316 = vmatprep.subr.msk.mxu0 %vm329_vm1, %v283_v2  ;;  %s1393_s15 = smov 1   ;;  %s1394_s16 = smov 111   ;;  %v1300_v24 = vld [vmem:[%s1605_s1 + $0x4] sm:$0xf]  ;;  %vm877_vm13 = vcmask 924672   ;;  %vm492_vm15 = vcmask 121856  }
  0x19   : > { %1317 = vmatpush1.msk.msra.mxu0 %vm329_vm1, %v254_v1  ;;  %v1460_v7 = vadd.s32 128, %v256_v6  ;;  %v262_v8 = vand.u32 15, %v256_v6  ;;  %vm294_vm7 = vcmp.ge.s32.totalorder %v256_v6, 16  ;;  %v306_v38 = vld [vmem:[%s1605_s1] sm:$0xf]  ;;  %p1335_p5 = scmp.ne.s32.totalorder %s1436_s22, 1 }
  0x1a   : > { %775 = vrot.lane.b32.xlu0 %v283_v2, %s1386_s7  ;;  %1318 = vmatmul.mubr.msk.f32.vlgmr.msra.gmra.mrb[0].mxu0 %vm325_vm2, %v1315_v4  ;;  %v1323_v42 = vld [vmem:[%s1605_s1 + $0x18] sm:$0xf]  ;;  %v1307_v52 = vld [vmem:[%s1605_s1 + $0x8] sm:$0xf]  ;;  %v1327_v55 = vld [vmem:[%s1605_s1 + $0x1c] sm:$0xf] }
  0x1b   : > { %864 = vmatprep.mubr.f32.mxu0 %v1387_v3  ;;  %v269_v9 = vand.u32 15, %v1460_v7  ;;  %vm1463_vm4 = vcmp.lt.s32.totalorder %v262_v8, 15  ;;  %vm1475_vm8 = vcmp.ge.s32.totalorder %v262_v8, 1  ;;  %vm884_vm12 = vcmp.lt.s32.totalorder %v1460_v7, 240  ;;  %v1331_v5 = vld [vmem:[%s1605_s1 + $0x20] sm:$0xf] }
  0x1c   : > { %310 = vrot.lane.b32.xlu1 %v254_v1, %s1388_s10  ;;  %vm1497_vm11 = vmand %vm294_vm7, %vm1475_vm8 }
  0x1d   : > { %vm1467_vm5 = vcmp.lt.s32.totalorder %v269_v9, 15  ;;  %vm1490_vm10 = vcmp.ge.s32.totalorder %v269_v9, 1  ;;  %vm1528_vm0 = vmand %vm294_vm7, %vm1463_vm4 }
  0x1e   : > { %284 = vrot.lane.b32.xlu0 %v283_v2, %s1389_s11  ;;  %vm886_vm14 = vmand %vm884_vm12, %vm1490_vm10 }
  0x20   : > { %287 = vrot.lane.b32.xlu1 %v254_v1, %s1389_s11 }
  0x22   : > { %873 = vrot.lane.b32.xlu0 %v254_v1, %s1390_s12 }
  0x24   : > { %875 = vrot.lane.b32.xlu1 %v283_v2, %s1390_s12 }
  0x26   : > { %487 = vrot.lane.b32.xlu0 %v283_v2, %s1391_s13 }
  0x28   : > { %490 = vrot.lane.b32.xlu1 %v254_v1, %s1391_s13 }
  0x2a   : > { %977 = vrot.lane.b32.xlu0 %v254_v1, %s1392_s14 }
  0x2c   : > { %979 = vrot.lane.b32.xlu1 %v283_v2, %s1392_s14 }
  0x2e   : > { %591 = vrot.lane.b32.xlu0 %v283_v2, %s1393_s15 }
  0x30   : > { %594 = vrot.lane.b32.xlu1 %v254_v1, %s1393_s15 }
  0x32   : > { %1077 = vrot.lane.b32.xlu0 %v254_v1, %s1394_s16 }
  0x34   : > { %1079 = vrot.lane.b32.xlu1 %v283_v2, %s1394_s16  ;;  %v1311_v2 = vld [vmem:[%s1605_s1 + $0xc] sm:$0xf] }
  0x88   : > { %v774_v10 = vpop.permute.xlu0 %773 }
  0x8a   : > { %v308_v11 = vpop.permute.xlu1 %307 }
  0x8c   : > { %v776_v14 = vpop.permute.xlu0 %775 }
  0x8d   : > { %v778_v15 = vsel %vm777_vm3, %v774_v10, %v776_v14  ;;  %v782_v16 = vsel %vm777_vm3, %v776_v14, %v774_v10  ;;  %vm981_vm3 = vcmask 916480  }
  0x8e   : > { %v787_v17 = vsel %vm1463_vm4, %v778_v15, 0.0  ;;  %v788_v18 = vsel %vm1467_vm5, %v782_v16, 0.0  ;;  %v311_v19 = vpop.permute.xlu1 %310 }
  0x8f   : > { %v316_v22 = vsel %vm312_vm6, %v308_v11, %v311_v19  ;;  %1320 = vmatprep.subr.msk.mxu0 %vm329_vm1, %v788_v18  ;;  %v313_v23 = vsel %vm312_vm6, %v311_v19, %v308_v11  ;;  %vm596_vm6 = vcmask 7168  }
  0x90   : > { %1301 = vmatprep.subr.msk.mxu1 %vm329_vm1, %v313_v23  ;;  %1321 = vmatpush1.msk.msra.mxu0 %vm329_vm1, %v787_v17  ;;  %v321_v25 = vsel %vm294_vm7, %v316_v22, 0.0  ;;  %v285_v26 = vpop.permute.xlu0 %284  ;;  %vm1081_vm7 = vcmask 908288   ;;  %v1188_v23 = vld [vmem:[#allocation3] sm:$0xf] }
  0x91   : > { %1302 = vmatpush1.msk.msra.mxu1 %vm329_vm1, %v321_v25  ;;  %1322 = vmatmul.mubr.msk.f32.vlgmr.msra.gmra.mrb[0].mxu0 %vm325_vm2, %v1319_v21  ;;  %v1179_v21 = vld [vmem:[#allocation2] sm:$0xf] }
  0x92   : > { %1303 = vmatmul.mubr.msk.f32.vlgmr.msra.gmra.mrb[0].mxu1 %vm325_vm2, %v1300_v24  ;;  %v288_v29 = vpop.permute.xlu1 %287  ;;  %968 = vmatprep.mubr.f32.mxu0 %v1387_v3 }
  0x93   : > { %v290_v30 = vsel %vm289_vm9, %v288_v29, %v285_v26  ;;  %v293_v31 = vsel %vm289_vm9, %v285_v26, %v288_v29  ;;  %480 = vmatprep.mubr.f32.mxu1 %v1387_v3  ;;  %vm1088_vm9 = vmand %vm884_vm12, %vm1467_vm5 }
  0x94   : > { %v304_v32 = vsel %vm1497_vm11, %v293_v31, 0.0  ;;  %v305_v33 = vsel %vm1490_vm10, %v290_v30, 0.0  ;;  %v874_v34 = vpop.permute.xlu0 %873 }
  0x95   : > { %1304 = vmatprep.subr.msk.mxu1 %vm329_vm1, %v305_v33 }
  0x96   : > { %v876_v35 = vpop.permute.xlu1 %875  ;;  %1305 = vmatpush1.msk.msra.mxu1 %vm329_vm1, %v304_v32 }
  0x97   : > { %v878_v36 = vsel %vm877_vm13, %v874_v34, %v876_v35  ;;  %v882_v37 = vsel %vm877_vm13, %v876_v35, %v874_v34  ;;  %v1214_v35 = vld [vmem:[%s1606_s2] sm:$0xf] (!%p1335_p5) }
  0x98   : > { %v891_v39 = vsel %vm1475_vm8, %v878_v36, 0.0  ;;  %v892_v40 = vsel %vm886_vm14, %v882_v37, 0.0  ;;  %v488_v41 = vpop.permute.xlu0 %487 }
  0x99   : > { %1324 = vmatprep.subr.msk.mxu0 %vm329_vm1, %v892_v40 }
  0x9a   : > { %v491_v44 = vpop.permute.xlu1 %490  ;;  %1306 = vmatmul.mubr.msk.f32.vlgmr.msra.gmra.mrb[0].mxu1 %vm325_vm2, %v306_v38  ;;  %1325 = vmatpush1.msk.msra.mxu0 %vm329_vm1, %v891_v39  ;;  %v1219_v38 = vld [vmem:[%s1607_s3] sm:$0xf] (!%p1335_p5) }
  0x9b   : > { %v493_v45 = vsel %vm492_vm15, %v491_v44, %v488_v41  ;;  %v496_v46 = vsel %vm492_vm15, %v488_v41, %v491_v44  ;;  %1326 = vmatmul.mubr.msk.f32.vlgmr.msra.gmra.mrb[0].mxu0 %vm325_vm2, %v1323_v42  ;;  %582 = vmatprep.mubr.f32.mxu1 %v1387_v3 }
  0x9c   : > { %v505_v47 = vsel %vm1528_vm0, %v496_v46, 0.0  ;;  %v506_v48 = vsel %vm1467_vm5, %v493_v45, 0.0  ;;  %v978_v49 = vpop.permute.xlu0 %977  ;;  %1068 = vmatprep.mubr.f32.mxu0 %v1387_v3 }
  0x9d   : > { %1308 = vmatprep.subr.msk.mxu1 %vm329_vm1, %v506_v48 }
  0x9e   : > { %v980_v50 = vpop.permute.xlu1 %979  ;;  %1309 = vmatpush1.msk.msra.mxu1 %vm329_vm1, %v505_v47 }
  0x9f   : > { %v986_v51 = vsel %vm981_vm3, %v980_v50, %v978_v49  ;;  %v982_v56 = vsel %vm981_vm3, %v978_v49, %v980_v50 }
  0xa0   : > { %v992_v53 = vsel %vm884_vm12, %v986_v51, 0.0  ;;  %v592_v54 = vpop.permute.xlu0 %591 }
  0xa1   : > { %1328 = vmatprep.subr.msk.mxu0 %vm329_vm1, %v992_v53 }
  0xa2   : > { %v595_v57 = vpop.permute.xlu1 %594  ;;  %1310 = vmatmul.mubr.msk.f32.vlgmr.msra.gmra.mrb[0].mxu1 %vm325_vm2, %v1307_v52  ;;  %1329 = vmatpush1.msk.msra.mxu0 %vm329_vm1, %v982_v56 }
  0xa3   : > { %v597_v58 = vsel %vm596_vm6, %v595_v57, %v592_v54  ;;  %v600_v59 = vsel %vm596_vm6, %v592_v54, %v595_v57  ;;  %1330 = vmatmul.mubr.msk.f32.vlgmr.msra.gmra.mrb[0].mxu0 %vm325_vm2, %v1327_v55  ;;  %682 = vmatprep.mubr.f32.mxu1 %v1387_v3 }
  0xa4   : > { %v605_v60 = vsel %vm1475_vm8, %v600_v59, 0.0  ;;  %v606_v61 = vsel %vm1490_vm10, %v597_v58, 0.0  ;;  %v1078_v62 = vpop.permute.xlu0 %1077  ;;  %1170 = vmatprep.mubr.f32.mxu0 %v1387_v3 }
  0xa5   : > { %1312 = vmatprep.subr.msk.mxu1 %vm329_vm1, %v606_v61 }
  0xa6   : > { %v1080_v63 = vpop.permute.xlu1 %1079  ;;  %1313 = vmatpush1.msk.msra.mxu1 %vm329_vm1, %v605_v60 }
  0xa7   : > { %v1082_v0 = vsel %vm1081_vm7, %v1078_v62, %v1080_v63  ;;  %v1086_v1 = vsel %vm1081_vm7, %v1080_v63, %v1078_v62 }
  0xa8   : > { %v1093_v4 = vsel %vm1463_vm4, %v1082_v0, 0.0  ;;  %v1094_v3 = vsel %vm1088_vm9, %v1086_v1, 0.0 }
  0xa9   : > { %1332 = vmatprep.subr.msk.mxu0 %vm329_vm1, %v1094_v3 }
  0xaa   : > { %1314 = vmatmul.mubr.msk.f32.vlgmr.msra.gmra.mrb[0].mxu1 %vm325_vm2, %v1311_v2  ;;  %1333 = vmatpush1.msk.msra.mxu0 %vm329_vm1, %v1093_v4 }
  0xab   : > { %1334 = vmatmul.mubr.msk.f32.vlgmr.msra.gmra.mrb[0].mxu0 %vm325_vm2, %v1331_v5  ;;  %vm1186_vm2 = vcmask 3072  }
 0x17d   : > { %v684_v6 = vpop.f32.mrb[0].mxu1 }
 0x17e   : > { %v686_v7 = vpop.f32.mrb[1].mxu1  ;;  %v1172_v8 = vpop.f32.mrb[0].mxu0 }
 0x17f   : > { %v1340_v9 = vadd.f32 %v1172_v8, %v684_v6  ;;  %v1174_v10 = vpop.f32.mrb[1].mxu0 }
 0x180   : > { %v1341_v11 = vadd.f32 %v1174_v10, %v686_v7 }
 0x181   : > { %v1180_v12 = vsel %vm329_vm1, %v1340_v9, 0.0  ;;  %v1189_v13 = vmul.f32 %v1340_v9, %v1340_v9 }
 0x182   : > { %v1200_v14 = vcombine.low %v1340_v9, %v1341_v11  ;;  %v1181_v15 = vsel %vm329_vm1, %v1341_v11, 0.0  ;;  %v1190_v16 = vmul.f32 %v1341_v11, %v1341_v11 }
 0x183   : > { %v1182_v17 = vadd.f32 %v1181_v15, %v1180_v12  ;;  %v1191_v18 = vsel %vm329_vm1, %v1189_v13, 0.0 }
 0x184   : > { %1202 = vst [vmem:[%s1448_s30] sm:$0xff] %v1200_v14  ;;  %v1192_v19 = vsel %vm329_vm1, %v1190_v16, 0.0 }
 0x185   : > { %1183 = vadd.xlane.f32.xlu0 %v1182_v17  ;;  %v1193_v20 = vadd.f32 %v1192_v19, %v1191_v18 }
 0x187   : > { %1194 = vadd.xlane.f32.xlu1 %v1193_v20 }
 0x211   : > { %1206 = sbr.rel (%p1335_p5) target bundleno = 569 (0x239), region = 44 }
 0x212   : > { %v1184_v22 = vpop.xlane.xlu0 %1183 }
 0x213   : > { %v1185_v24 = vadd.f32 %v1184_v22, %v1179_v21 }
 0x214   : > { %v1195_v25 = vpop.xlane.xlu1 %1194 }
 0x215   : > { %1187 = vst.msk [vmem:[#allocation2] sm:$0xf] %vm1186_vm2, %v1185_v24  ;;  %v1196_v26 = vadd.f32 %v1195_v25, %v1188_v23 }
 0x217   : > { %1197 = vst.msk [vmem:[#allocation3] sm:$0xf] %vm1186_vm2, %v1196_v26 }
 0x21c   : > { %v1207_v27 = vld [vmem:[#allocation2] sm:$0xf] }
 0x21d   : > { %v1208_v29 = vmul.f32 0.001953125, %v1207_v27 }
 0x21e   : > { %v1209_v28 = vld [vmem:[#allocation3] sm:$0xf] }
 0x21f   : > { %v1210_v30 = vmul.f32 0.001953125, %v1209_v28  ;;  %v1211_v31 = vmul.f32 %v1208_v29, %v1208_v29 }
 0x221   : > { %v1212_v32 = vsub.f32 %v1210_v30, %v1211_v31 }
 0x223   : > { %v1213_v33 = vmax.f32 %v1212_v32, 0.0 }
 0x225   : > { %v1215_v34 = vadd.f32 1e-05, %v1213_v33 }
 0x227   : > { %1375 = vrsqrt.f32 %v1215_v34 }
 0x231   : > { %v1376_v36 = vpop.eup %1375 }
 0x232   : > { %v1217_v37 = vmul.f32 %v1376_v36, %v1214_v35 }
 0x234   : > { %1218 = vst.msk [vmem:[%s1609_s5] sm:$0xf] %vm1186_vm2, %v1217_v37  ;;  %v1220_v39 = vmul.f32 %v1217_v37, %v1208_v29 }
 0x236   : > { %v1221_v40 = vsub.f32 %v1219_v38, %v1220_v39 }
 0x238   : > { %1222 = vst.msk [vmem:[%s1610_s6] sm:$0xf] %vm1186_vm2, %v1221_v40 }
 0x239 PF: > { %s17_s21 = sadd.s32 1, %s1383_s21  }
 0x23a   : > { %p14_p6 = scmp.ge.s32.totalorder %s17_s21, 4  }
 0x23c   :  { %16 = sbr.rel (!%p14_p6) target bundleno = 1 (0x1), region = 98 }

// kernel: decode_block.4
= control target key start
LH: loop header
LB: loop body
LE: loop exit
PB: predicated region body
PF: predicated region fallthrough
CT: control target
= control target key end

     0   :  { %s1519_s27 = smov 0   ;;  %s1692_s0 = inlined_call_operand.vmem [shape: f32[2,4,256], index: 0, kind: input, shape index: {}]   ;;  %s1693_s1 = inlined_call_operand.vmem [shape: f32[9,8,4], index: 1, kind: input, shape index: {}]   ;;  %s1694_s2 = inlined_call_operand.vmem [shape: f32[8,1], index: 2, kind: input, shape index: {}]   ;;  %s1695_s3 = inlined_call_operand.vmem [shape: f32[8,1], index: 3, kind: input, shape index: {}]   ;;  %s1696_s4 = inlined_call_operand.vmem [shape: f32[4,1], index: 4, kind: input, shape index: {}]   ;;  %s1697_s5 = inlined_call_operand.vmem [shape: f32[4,1], index: 5, kind: input, shape index: {}]   ;;  %s1698_s6 = inlined_call_operand.vmem [shape: f32[2,8,256], index: 6, kind: output, shape index: {0}]   ;;  %s1699_s7 = inlined_call_operand.vmem [shape: f32[8,1], index: 7, kind: output, shape index: {1}]   ;;  %s1700_s8 = inlined_call_operand.vmem [shape: f32[8,1], index: 8, kind: output, shape index: {2}]  }
   0x1 LB: > { %s1525_s28 = sadd.s32 4294967295, %s1460_s27   ;;  %p1369_p0 = scmp.ge.s32.totalorder %s1460_s27, 1  ;;  %s1460_s27 = sphi %s1519_s27, %s19_s27  }
   0x2   : > { %p257_p1 = scmp.lt.s32.totalorder %s1460_s27, 3 }
   0x4   : > { %p258_p2 = pnand %p1369_p0, %p257_p1 }
   0x5   : > { %p291_p3 = scmp.lt.s32.totalorder (!%p258_p2), %s1525_s28, 1  ;;  %p1374_p4 = scmp.ne.s32.totalorder (!%p258_p2), %s1525_s28, 0 }
   0x6   : > { %261 = sbr.rel (%p258_p2) target bundleno = 709 (0x2c5), region = 44 }
   0xd   : > { %s292_s29 = scalar_select %p291_p3, %s1525_s28, 1 }
   0xe   : > { %304 = sbr.rel (%p1374_p4) target bundleno = 21 (0x15), region = 48  ;;  %vm305_vm0 = vcmask (!%p1374_p4), 7168   ;;  %v1462_v0 = vmov (!%p1374_p4), 0.0  }
   0xf   : > { %s1413_s30 = sshll.u32 %s292_s29, 3  ;;  %s1414_s9 = sshll.u32 %s292_s29, 4  ;;  %306 = vst.msk [vmem:[#allocation2] sm:$0xff] (!%p1374_p4), %vm305_vm0, %v1462_v0  ;;  %307 = vst.msk [vmem:[#allocation3] sm:$0xff] (!%p1374_p4), %vm305_vm0, %v1462_v0 }
  0x10   : > { %s295_s12 = scalar_lea.vmem %s1692_s0, %s1413_s30  ;;  %s1537_s15 = scalar_lea.vmem %s1698_s6, %s1414_s9 }
  0x15 PF: > { %v309_v1 = vld [vmem:[%s1696_s4] sm:$0xf]  ;;  %v1463_v2 = vmov 0   ;;  %v1464_v4 = vmov 839922192   ;;  %v317_v6 = vlaneseq  ;;  %v1465_v11 = vmov 0.0  }
  0x16   : > { %1451 = vset.pattern.permute.xlu0 %v1463_v2  ;;  %v323_v3 = vld [vmem:[%s1697_s5] sm:$0xf]  ;;  %v315_v5 = vunpack.c.l.s4 %v1464_v4  ;;  %847 = vmatprep.mubr.f32.mxu0 %v1465_v11  ;;  %vm412_vm1 = vcmask 1043456   ;;  %s1466_s20 = smov 127   ;;  %vm408_vm2 = vcmask 31744   ;;  %s1467_s23 = smov 16  }
  0x17   : > { %312 = vperm.xlu0 %1451, %v309_v1   ;;  %v318_v8 = vshrl.u32 %v317_v6, 7  ;;  %483 = vmatprep.mubr.f32.mxu1 %v1465_v11  ;;  %v308_v13 = vld [vmem:[%s295_s12] sm:$0xff]  ;;  %s1468_s24 = smov 113   ;;  %s1469_s25 = smov 17   ;;  %v339_v21 = vand.u32 127, %v317_v6  ;;  %vm395_vm3 = vcmask 130048  }
  0x18   : > { %v316_v7 = vunpack.c.0.s8 %v315_v5  ;;  %v1390_v20 = vld [vmem:[%s1693_s1 + $0x20] sm:$0xff]  ;;  %s1470_s26 = smov 112   ;;  %s1471_s29 = smov 15   ;;  %v1375_v30 = vld [vmem:[%s1693_s1 + $0x8] sm:$0xff]  ;;  %vm860_vm5 = vcmask 1039360   ;;  %vm372_vm9 = vcmask 138240  }
  0x19   : > { %s1472_s30 = smov 1   ;;  %s1473_s9 = smov 111   ;;  %v1555_v22 = vadd.s32 128, %v339_v21  ;;  %vm377_vm4 = vcmp.ge.s32.totalorder %v339_v21, 16  ;;  %v345_v25 = vand.u32 15, %v339_v21  ;;  %v1394_v42 = vld [vmem:[%s1693_s1 + $0x28] sm:$0xff] }
  0x1a   : > { %v319_v9 = vsub.s32 %v316_v7, %v318_v8  ;;  %vm960_vm13 = vcmask 924672   ;;  %v389_v51 = vld [vmem:[%s1693_s1] sm:$0xff]  ;;  %vm575_vm15 = vcmask 121856   ;;  %v1398_v57 = vld [vmem:[%s1693_s1 + $0x30] sm:$0xff]  ;;  %v1402_v5 = vld [vmem:[%s1693_s1 + $0x38] sm:$0xff]  ;;  %p1410_p5 = scmp.ne.s32.totalorder %s1525_s28, 1 }
  0x1b   : > { %326 = vperm.xlu0 %1451, %v323_v3   ;;  %v352_v26 = vand.u32 15, %v1555_v22  ;;  %vm1564_vm6 = vcmp.lt.s32.totalorder %v345_v25, 15  ;;  %vm1573_vm8 = vcmp.ge.s32.totalorder %v345_v25, 1  ;;  %vm967_vm12 = vcmp.lt.s32.totalorder %v1555_v22, 240  ;;  %v1382_v0 = vld [vmem:[%s1693_s1 + $0x10] sm:$0xff]  ;;  %v1289_v44 = vld [vmem:[%s1694_s2] sm:$0xff] (!%p1410_p5) }
  0x1c   : > { %vm1593_vm11 = vmand %vm377_vm4, %vm1573_vm8 }
  0x1d   : > { %vm1568_vm7 = vcmp.lt.s32.totalorder %v352_v26, 15  ;;  %vm1586_vm10 = vcmp.ge.s32.totalorder %v352_v26, 1  ;;  %vm582_vm0 = vmand %vm377_vm4, %vm1564_vm6 }
  0x1e   : > { %vm969_vm14 = vmand %vm967_vm12, %vm1586_vm10 }
  0x96   : > { %v313_v10 = vpop.permute.xlu0 %312 }
  0x97   : > { %v320_v12 = vrot.slane %v313_v10, %v319_v9 }
  0x99   : > { %v322_v15 = vmul.f32 %v320_v12, %v308_v13  ;;  %v1386_v13 = vld [vmem:[%s1693_s1 + $0x18] sm:$0xff] }
  0x9a   : > { %v327_v14 = vpop.permute.xlu0 %326 }
  0x9b   : > { %v334_v16 = vrot.slane %v327_v14, %v319_v9 }
  0x9d   : > { %v336_v17 = vadd.f32 %v334_v16, %v322_v15 }
  0x9f   : > { %v337_v18 = vmax.f32 %v336_v17, 0.0 }
  0xa1   : > { %856 = vrot.lane.b32.xlu1 %v337_v18, %s1466_s20  ;;  %v366_v19 = vcombine.high %v337_v18, %v337_v18 }
  0xa3   : > { %390 = vrot.lane.b32.xlu0 %v366_v19, %s1467_s23  ;;  %1391 = vmatprep.subr.msk.mxu0 %vm412_vm1, %v366_v19 }
  0xa4   : > { %1392 = vmatpush1.msk.msra.mxu0 %vm412_vm1, %v337_v18 }
  0xa5   : > { %393 = vrot.lane.b32.xlu1 %v337_v18, %s1467_s23  ;;  %1393 = vmatmul.mubr.msk.f32.vlgmr.msra.gmra.mrb[0].mxu0 %vm408_vm2, %v1390_v20 }
  0xa6   : > { %947 = vmatprep.mubr.f32.mxu0 %v1465_v11 }
  0xa7   : > { %956 = vrot.lane.b32.xlu0 %v337_v18, %s1468_s24 }
  0xa9   : > { %858 = vrot.lane.b32.xlu1 %v366_v19, %s1466_s20 }
  0xab   : > { %367 = vrot.lane.b32.xlu0 %v366_v19, %s1469_s25 }
  0xad   : > { %370 = vrot.lane.b32.xlu1 %v337_v18, %s1469_s25 }
  0xaf   : > { %1060 = vrot.lane.b32.xlu0 %v337_v18, %s1470_s26 }
  0xb1   : > { %958 = vrot.lane.b32.xlu1 %v366_v19, %s1468_s24 }
  0xb3   : > { %570 = vrot.lane.b32.xlu0 %v366_v19, %s1471_s29 }
  0xb5   : > { %573 = vrot.lane.b32.xlu1 %v337_v18, %s1471_s29 }
  0xb7   : > { %674 = vrot.lane.b32.xlu0 %v366_v19, %s1472_s30 }
  0xb9   : > { %1062 = vrot.lane.b32.xlu1 %v366_v19, %s1470_s26 }
  0xbb   : > { %1160 = vrot.lane.b32.xlu0 %v337_v18, %s1473_s9 }
  0xbd   : > { %677 = vrot.lane.b32.xlu1 %v337_v18, %s1472_s30 }
  0xc1   : > { %1162 = vrot.lane.b32.xlu1 %v366_v19, %s1473_s9  ;;  %v1406_v19 = vld [vmem:[%s1693_s1 + $0x40] sm:$0xff] }
 0x113   : > { %v857_v23 = vpop.permute.xlu1 %856 }
 0x115   : > { %v391_v24 = vpop.permute.xlu0 %390 }
 0x117   : > { %v394_v27 = vpop.permute.xlu1 %393 }
 0x118   : > { %v399_v28 = vsel %vm395_vm3, %v391_v24, %v394_v27  ;;  %v396_v29 = vsel %vm395_vm3, %v394_v27, %v391_v24  ;;  %vm1064_vm3 = vcmask 916480  }
 0x119   : > { %1376 = vmatprep.subr.msk.mxu1 %vm412_vm1, %v396_v29  ;;  %v957_v31 = vpop.permute.xlu0 %956  ;;  %v404_v32 = vsel %vm377_vm4, %v399_v28, 0.0  ;;  %vm679_vm4 = vcmask 7168  }
 0x11a   : > { %1377 = vmatpush1.msk.msra.mxu1 %vm412_vm1, %v404_v32  ;;  %v1268_v32 = vld [vmem:[#allocation3] sm:$0xff] }
 0x11b   : > { %v859_v35 = vpop.permute.xlu1 %858  ;;  %1378 = vmatmul.mubr.msk.f32.vlgmr.msra.gmra.mrb[0].mxu1 %vm408_vm2, %v1375_v30  ;;  %v1262_v30 = vld [vmem:[#allocation2] sm:$0xff] }
 0x11c   : > { %v861_v37 = vsel %vm860_vm5, %v857_v23, %v859_v35  ;;  %v865_v38 = vsel %vm860_vm5, %v859_v35, %v857_v23  ;;  %563 = vmatprep.mubr.f32.mxu1 %v1465_v11  ;;  %vm1164_vm5 = vcmask 908288  }
 0x11d   : > { %v870_v39 = vsel %vm1564_vm6, %v861_v37, 0.0  ;;  %v871_v40 = vsel %vm1568_vm7, %v865_v38, 0.0  ;;  %v368_v41 = vpop.permute.xlu0 %367 }
 0x11e   : > { %1395 = vmatprep.subr.msk.mxu0 %vm412_vm1, %v871_v40 }
 0x11f   : > { %v371_v45 = vpop.permute.xlu1 %370  ;;  %1396 = vmatpush1.msk.msra.mxu0 %vm412_vm1, %v870_v39 }
 0x120   : > { %v373_v46 = vsel %vm372_vm9, %v371_v45, %v368_v41  ;;  %v376_v47 = vsel %vm372_vm9, %v368_v41, %v371_v45  ;;  %1397 = vmatmul.mubr.msk.f32.vlgmr.msra.gmra.mrb[0].mxu0 %vm408_vm2, %v1394_v42  ;;  %vm1171_vm9 = vmand %vm967_vm12, %vm1568_vm7 }
 0x121   : > { %v387_v48 = vsel %vm1593_vm11, %v376_v47, 0.0  ;;  %v388_v49 = vsel %vm1586_vm10, %v373_v46, 0.0  ;;  %v1061_v50 = vpop.permute.xlu0 %1060  ;;  %1051 = vmatprep.mubr.f32.mxu0 %v1465_v11  ;;  %v1294_v47 = vld [vmem:[%s1695_s3] sm:$0xff] (!%p1410_p5) }
 0x122   : > { %1379 = vmatprep.subr.msk.mxu1 %vm412_vm1, %v388_v49 }
 0x123   : > { %1380 = vmatpush1.msk.msra.mxu1 %vm412_vm1, %v387_v48  ;;  %v959_v52 = vpop.permute.xlu1 %958 }
 0x124   : > { %v961_v53 = vsel %vm960_vm13, %v957_v31, %v959_v52  ;;  %v965_v54 = vsel %vm960_vm13, %v959_v52, %v957_v31  ;;  %1381 = vmatmul.mubr.msk.f32.vlgmr.msra.gmra.mrb[0].mxu1 %vm408_vm2, %v389_v51 }
 0x125   : > { %v974_v55 = vsel %vm1573_vm8, %v961_v53, 0.0  ;;  %v975_v56 = vsel %vm969_vm14, %v965_v54, 0.0  ;;  %665 = vmatprep.mubr.f32.mxu1 %v1465_v11  ;;  %v571_v58 = vpop.permute.xlu0 %570 }
 0x126   : > { %1399 = vmatprep.subr.msk.mxu0 %vm412_vm1, %v975_v56 }
 0x127   : > { %v574_v59 = vpop.permute.xlu1 %573  ;;  %1400 = vmatpush1.msk.msra.mxu0 %vm412_vm1, %v974_v55 }
 0x128   : > { %v576_v60 = vsel %vm575_vm15, %v574_v59, %v571_v58  ;;  %v579_v61 = vsel %vm575_vm15, %v571_v58, %v574_v59  ;;  %1401 = vmatmul.mubr.msk.f32.vlgmr.msra.gmra.mrb[0].mxu0 %vm408_vm2, %v1398_v57 }
 0x129   : > { %v588_v62 = vsel %vm582_vm0, %v579_v61, 0.0  ;;  %v589_v63 = vsel %vm1568_vm7, %v576_v60, 0.0  ;;  %1151 = vmatprep.mubr.f32.mxu0 %v1465_v11  ;;  %v675_v3 = vpop.permute.xlu0 %674 }
 0x12a   : > { %1383 = vmatprep.subr.msk.mxu1 %vm412_vm1, %v589_v63 }
 0x12b   : > { %1384 = vmatpush1.msk.msra.mxu1 %vm412_vm1, %v588_v62  ;;  %v1063_v1 = vpop.permute.xlu1 %1062 }
 0x12c   : > { %v1069_v2 = vsel %vm1064_vm3, %v1063_v1, %v1061_v50  ;;  %1385 = vmatmul.mubr.msk.f32.vlgmr.msra.gmra.mrb[0].mxu1 %vm408_vm2, %v1382_v0  ;;  %v1065_v6 = vsel %vm1064_vm3, %v1061_v50, %v1063_v1 }
 0x12d   : > { %v1075_v4 = vsel %vm967_vm12, %v1069_v2, 0.0  ;;  %765 = vmatprep.mubr.f32.mxu1 %v1465_v11  ;;  %v1161_v14 = vpop.permute.xlu0 %1160 }
 0x12e   : > { %1403 = vmatprep.subr.msk.mxu0 %vm412_vm1, %v1075_v4 }
 0x12f   : > { %v678_v7 = vpop.permute.xlu1 %677  ;;  %1404 = vmatpush1.msk.msra.mxu0 %vm412_vm1, %v1065_v6 }
 0x130   : > { %v680_v8 = vsel %vm679_vm4, %v678_v7, %v675_v3  ;;  %v683_v9 = vsel %vm679_vm4, %v675_v3, %v678_v7  ;;  %1405 = vmatmul.mubr.msk.f32.vlgmr.msra.gmra.mrb[0].mxu0 %vm408_vm2, %v1402_v5 }
 0x131   : > { %v688_v10 = vsel %vm1573_vm8, %v683_v9, 0.0  ;;  %v689_v12 = vsel %vm1586_vm10, %v680_v8, 0.0  ;;  %1253 = vmatprep.mubr.f32.mxu0 %v1465_v11 }
 0x132   : > { %1387 = vmatprep.subr.msk.mxu1 %vm412_vm1, %v689_v12 }
 0x133   : > { %1388 = vmatpush1.msk.msra.mxu1 %vm412_vm1, %v688_v10  ;;  %v1163_v15 = vpop.permute.xlu1 %1162 }
 0x134   : > { %v1165_v16 = vsel %vm1164_vm5, %v1161_v14, %v1163_v15  ;;  %v1169_v17 = vsel %vm1164_vm5, %v1163_v15, %v1161_v14  ;;  %1389 = vmatmul.mubr.msk.f32.vlgmr.msra.gmra.mrb[0].mxu1 %vm408_vm2, %v1386_v13 }
 0x135   : > { %v1176_v11 = vsel %vm1564_vm6, %v1165_v16, 0.0  ;;  %v1177_v18 = vsel %vm1171_vm9, %v1169_v17, 0.0 }
 0x136   : > { %1407 = vmatprep.subr.msk.mxu0 %vm412_vm1, %v1177_v18 }
 0x137   : > { %1408 = vmatpush1.msk.msra.mxu0 %vm412_vm1, %v1176_v11 }
 0x138   : > { %1409 = vmatmul.mubr.msk.f32.vlgmr.msra.gmra.mrb[0].mxu0 %vm408_vm2, %v1406_v19 }
 0x207   : > { %v767_v20 = vpop.f32.mrb[0].mxu1 }
 0x208   : > { %v769_v21 = vpop.f32.mrb[1].mxu1 }
 0x20b   : > { %v1255_v22 = vpop.f32.mrb[0].mxu0 }
 0x20c   : > { %v1415_v23 = vadd.f32 %v1255_v22, %v767_v20  ;;  %v1257_v24 = vpop.f32.mrb[1].mxu0 }
 0x20d   : > { %v1416_v25 = vadd.f32 %v1257_v24, %v769_v21 }
 0x20e   : > { %1276 = vst [vmem:[%s1537_s15] sm:$0xff] %v1415_v23  ;;  %v1269_v26 = vmul.f32 %v1415_v23, %v1415_v23 }
 0x20f   : > { %1277 = vst [vmem:[%s1537_s15 + $0x8] sm:$0xff] %v1416_v25  ;;  %v1263_v27 = vadd.f32 %v1416_v25, %v1415_v23  ;;  %v1270_v28 = vmul.f32 %v1416_v25, %v1416_v25 }
 0x211   : > { %1264 = vadd.xlane.f32.xlu0 %v1263_v27  ;;  %v1271_v29 = vadd.f32 %v1270_v28, %v1269_v26 }
 0x213   : > { %1272 = vadd.xlane.f32.xlu1 %v1271_v29 }
 0x29d   : > { %1281 = sbr.rel (%p1410_p5) target bundleno = 709 (0x2c5), region = 52 }
 0x29e   : > { %v1265_v31 = vpop.xlane.xlu0 %1264 }
 0x29f   : > { %v1266_v33 = vadd.f32 %v1265_v31, %v1262_v30 }
 0x2a0   : > { %v1273_v34 = vpop.xlane.xlu1 %1272 }
 0x2a1   : > { %1267 = vst.msk [vmem:[#allocation2] sm:$0xff] %vm679_vm4, %v1266_v33  ;;  %v1274_v35 = vadd.f32 %v1273_v34, %v1268_v32 }
 0x2a3   : > { %1275 = vst.msk [vmem:[#allocation3] sm:$0xff] %vm679_vm4, %v1274_v35 }
 0x2a8   : > { %v1282_v36 = vld [vmem:[#allocation2] sm:$0xff] }
 0x2a9   : > { %v1283_v38 = vmul.f32 0.001953125, %v1282_v36 }
 0x2aa   : > { %v1284_v37 = vld [vmem:[#allocation3] sm:$0xff] }
 0x2ab   : > { %v1285_v39 = vmul.f32 0.001953125, %v1284_v37  ;;  %v1286_v40 = vmul.f32 %v1283_v38, %v1283_v38 }
 0x2ad   : > { %v1287_v41 = vsub.f32 %v1285_v39, %v1286_v40 }
 0x2af   : > { %v1288_v42 = vmax.f32 %v1287_v41, 0.0 }
 0x2b1   : > { %v1290_v43 = vadd.f32 1e-05, %v1288_v42 }
 0x2b3   : > { %1452 = vrsqrt.f32 %v1290_v43 }
 0x2bd   : > { %v1453_v45 = vpop.eup %1452 }
 0x2be   : > { %v1292_v46 = vmul.f32 %v1453_v45, %v1289_v44 }
 0x2c0   : > { %1293 = vst.msk [vmem:[%s1699_s7] sm:$0xff] %vm679_vm4, %v1292_v46  ;;  %v1295_v48 = vmul.f32 %v1292_v46, %v1283_v38 }
 0x2c2   : > { %v1296_v49 = vsub.f32 %v1294_v47, %v1295_v48 }
 0x2c4   : > { %1297 = vst.msk [vmem:[%s1700_s8] sm:$0xff] %vm679_vm4, %v1296_v49 }
 0x2c5 PF: > { %s19_s27 = sadd.s32 1, %s1460_s27  }
 0x2c6   : > { %p16_p6 = scmp.ge.s32.totalorder %s19_s27, 4  }
 0x2c8   :  { %18 = sbr.rel (!%p16_p6) target bundleno = 1 (0x1), region = 106 }

</bundles_post_ra>
